<compile_context>
chip_gen: v7x
topology: tpu7x:2x2x1
jax: 0.10.0
libtpu: 0.0.40
codegen_flags: <defaults>
</compile_context>

<pallas_src>
import functools

import jax
import jax.numpy as jnp
import numpy as np
from jax.experimental import pallas as pl
from jax.experimental.pallas import tpu as pltpu

LN_HIDDEN = 256      # hidden width of every head (Linear -> ReLU -> LayerNorm(256) -> Linear)
NUM_HEADS = 4        # task / bw / path / value
OUT_PAD = 128        # lane-dense packed output width


# ----------------------------------------------------------------------------
# Fused Pallas kernel: GNN encoders + joint + 4 heads + sigmoid/exp
# ----------------------------------------------------------------------------
def policy_fused_kernel(
    tx_ref, tadj_ref, te_ref,           # task graph:  x (B,Nt,Dn), adj (B,Nt,Nt), e_flat (B,Nt,Nt*De)
    px_ref, padj_ref, pe_ref,           # phys graph
    t_ws_ref, t_wn_ref, t_r_ref, t_we_ref, t_b_ref,   # task GNN weights
    p_ws_ref, p_wn_ref, p_r_ref, p_we_ref, p_b_ref,   # phys GNN weights
    w1t_ref, w1p_ref, b1_ref, g_ref, beta_ref,        # stacked head layer-1 + LayerNorm params
    w2_ref, b2_ref,                                   # block-diagonal head layer-2 (1024,128), packed bias (1,128)
    out_ref,                                          # packed output (B, 128)
    temb_ref, pemb_ref,                               # VMEM scratch (B, H) each
    *, bw_mean_col, bw_std_col):
  B = tx_ref.shape[0]

  def encode_one(b, x_ref, adj_ref, ef_ref, ws_ref, wn_ref, r_ref, we_ref, bias_ref):
    x = x_ref[b]                                    # (N, Dn)
    adj = adj_ref[b]                                # (N, N)
    ef = ef_ref[b]                                  # (N, N*De), ef[i, j*De+k] = e[i, j, k]
    nbr = jnp.dot(adj, x, preferred_element_type=jnp.float32)           # (N, Dn)
    # adj_rep[i, j*De+k] = adj[i, j]  (R is the 0/1 "repeat" matrix)
    adj_rep = jnp.dot(adj, r_ref[...], preferred_element_type=jnp.float32)
    # edge contribution: (sum_j adj[i,j] * e[i,j,:]) @ We  ==  (adj_rep * ef) @ tile(We, N)
    h = (jnp.dot(x, ws_ref[...], preferred_element_type=jnp.float32)
         + jnp.dot(nbr, wn_ref[...], preferred_element_type=jnp.float32)
         + jnp.dot(adj_rep * ef, we_ref[...], preferred_element_type=jnp.float32)
         + bias_ref[...])
    h = jnp.maximum(h, 0.0)                         # ReLU
    return jnp.mean(h, axis=0, keepdims=True)       # graph mean pool -> (1, H)

  # --- encoders (B=2, static unrolled), embeddings kept in VMEM scratch ---
  for b in range(B):
    temb_ref[b:b + 1, :] = encode_one(b, tx_ref, tadj_ref, te_ref,
                                      t_ws_ref, t_wn_ref, t_r_ref, t_we_ref, t_b_ref)
    pemb_ref[b:b + 1, :] = encode_one(b, px_ref, padj_ref, pe_ref,
                                      p_ws_ref, p_wn_ref, p_r_ref, p_we_ref, p_b_ref)

  # --- stacked heads layer 1:  joint @ W1_all  ==  temb @ W1_top + pemb @ W1_bot ---
  h = (jnp.dot(temb_ref[...], w1t_ref[...], preferred_element_type=jnp.float32)
       + jnp.dot(pemb_ref[...], w1p_ref[...], preferred_element_type=jnp.float32)
       + b1_ref[...])
  h = jnp.maximum(h, 0.0)                            # (B, 4*256)

  # --- per-head LayerNorm(256) + block-diagonal second Linear, accumulated ---
  raw = jnp.zeros(out_ref.shape, jnp.float32) + b2_ref[...]     # (B, 128)
  for c in range(NUM_HEADS):
    lo, hi = c * LN_HIDDEN, (c + 1) * LN_HIDDEN
    hc = h[:, lo:hi]
    mu = jnp.mean(hc, axis=-1, keepdims=True)
    var = jnp.mean(jnp.square(hc - mu), axis=-1, keepdims=True)
    hn = (hc - mu) * jax.lax.rsqrt(var + 1e-5) * g_ref[:, lo:hi] + beta_ref[:, lo:hi]
    raw = raw + jnp.dot(hn, w2_ref[lo:hi, :], preferred_element_type=jnp.float32)

  # --- in-kernel sigmoid / exp on the bw columns of the packed slab ---
  col = jax.lax.broadcasted_iota(jnp.int32, raw.shape, 1)
  out = jnp.where(col == bw_mean_col, jax.nn.sigmoid(raw),
                  jnp.where(col == bw_std_col, jnp.exp(raw) + 1e-6, raw))
  out_ref[...] = out


# ----------------------------------------------------------------------------
# Wrapper
# ----------------------------------------------------------------------------
def policy_forward(params, num_phys_nodes, task_x, task_adj, task_e,
                   phys_x, phys_adj, phys_e):
  B, Nt, _ = task_x.shape
  Np_ = phys_x.shape[1]
  H = params["t_b"].shape[1]
  P = num_phys_nodes

  te_flat = task_e.reshape(B, Nt, -1)   # contiguous reshape (free)
  pe_flat = phys_e.reshape(B, Np_, -1)

  kernel = functools.partial(policy_fused_kernel, bw_mean_col=P, bw_std_col=P + 1)
  packed = pl.pallas_call(
      kernel,
      out_shape=jax.ShapeDtypeStruct((B, OUT_PAD), jnp.float32),
      scratch_shapes=[pltpu.VMEM((B, H), jnp.float32),
                      pltpu.VMEM((B, H), jnp.float32)],
  )(task_x, task_adj, te_flat, phys_x, phys_adj, pe_flat,
    params["t_ws"], params["t_wn"], params["t_r"], params["t_we"], params["t_b"],
    params["p_ws"], params["p_wn"], params["p_r"], params["p_we"], params["p_b"],
    params["w1t"], params["w1p"], params["b1"], params["gamma"], params["beta"],
    params["w2"], params["b2"])

  task_logits = packed[:, :P]                       # (B, num_phys_nodes)
  bw_mean = packed[:, P]                            # (B,)
  bw_std = packed[:, P + 1]                         # (B,)
  path_score = packed[:, P + 2:P + 3]               # (B, 1)
  value = packed[:, P + 3:P + 4]                    # (B, 1)
  return task_logits, bw_mean, bw_std, path_score, value


# ----------------------------------------------------------------------------
# Parameter init (xavier_uniform weights, zero biases) + one-time fused packing
# ----------------------------------------------------------------------------
def xavier(key, shape):
  fan_in, fan_out = shape
  bound = float(np.sqrt(6.0 / (fan_in + fan_out)))
  return jax.random.uniform(key, shape, jnp.float32, -bound, bound)


def init_gnn(key, node_dim, edge_dim, hidden):
  k1, k2, k3 = jax.random.split(key, 3)
  return dict(ws=xavier(k1, (node_dim, hidden)),
              wn=xavier(k2, (node_dim, hidden)),
              we=xavier(k3, (edge_dim, hidden)),
              b=jnp.zeros((1, hidden), jnp.float32))


def init_head(key, in_dim, out_dim, hidden=LN_HIDDEN):
  k1, k2 = jax.random.split(key)
  return dict(w1=xavier(k1, (in_dim, hidden)), b1=jnp.zeros((1, hidden), jnp.float32),
              gamma=jnp.ones((1, hidden), jnp.float32), beta=jnp.zeros((1, hidden), jnp.float32),
              w2=xavier(k2, (hidden, out_dim)), b2=jnp.zeros((1, out_dim), jnp.float32))


def pack_params(raw, n_task, task_edge_dim, n_phys, phys_edge_dim, num_phys_nodes):
  """One-time repack of the per-module params into fused kernel operands."""
  H = raw["task_gnn"]["b"].shape[1]
  heads = [raw["task_head"], raw["bw_head"], raw["path_head"], raw["value_head"]]
  out_dims = [num_phys_nodes, 2, 1, 1]
  offs = [0]
  for d in out_dims:
    offs.append(offs[-1] + d)
  assert offs[-1] <= OUT_PAD

  w1_all = jnp.concatenate([hd["w1"] for hd in heads], axis=1)      # (2H, 4*256)
  b1 = jnp.concatenate([hd["b1"] for hd in heads], axis=1)          # (1, 4*256)
  gamma = jnp.concatenate([hd["gamma"] for hd in heads], axis=1)
  beta = jnp.concatenate([hd["beta"] for hd in heads], axis=1)

  w2 = jnp.zeros((NUM_HEADS * LN_HIDDEN, OUT_PAD), jnp.float32)     # block diagonal
  b2 = jnp.zeros((1, OUT_PAD), jnp.float32)
  for c, hd in enumerate(heads):
    lo, hi = c * LN_HIDDEN, (c + 1) * LN_HIDDEN
    co, ce = offs[c], offs[c + 1]
    w2 = w2.at[lo:hi, co:ce].set(hd["w2"])
    b2 = b2.at[0:1, co:ce].set(hd["b2"])

  def repeat_mat(n, de):
    r = np.zeros((n, n * de), np.float32)
    for j in range(n):
      r[j, j * de:(j + 1) * de] = 1.0
    return jnp.asarray(r)

  tg, pg = raw["task_gnn"], raw["phys_gnn"]
  return dict(
      t_ws=tg["ws"], t_wn=tg["wn"], t_r=repeat_mat(n_task, task_edge_dim),
      t_we=jnp.tile(tg["we"], (n_task, 1)), t_b=tg["b"],
      p_ws=pg["ws"], p_wn=pg["wn"], p_r=repeat_mat(n_phys, phys_edge_dim),
      p_we=jnp.tile(pg["we"], (n_phys, 1)), p_b=pg["b"],
      w1t=w1_all[:H], w1p=w1_all[H:], b1=b1, gamma=gamma, beta=beta,
      w2=w2, b2=b2)


# ----------------------------------------------------------------------------
# Pure-JAX reference (for correctness check)
# ----------------------------------------------------------------------------
def ref_gnn(x, adj, e, p):
  eagg = jnp.einsum("bij,bije->bie", adj, e)
  nbr = jnp.einsum("bij,bjd->bid", adj, x)
  h = x @ p["ws"] + nbr @ p["wn"] + eagg @ p["we"] + p["b"]
  return jnp.mean(jnp.maximum(h, 0.0), axis=1)


def ref_head(x, p):
  h = jnp.maximum(x @ p["w1"] + p["b1"], 0.0)
  mu = h.mean(-1, keepdims=True)
  var = ((h - mu) ** 2).mean(-1, keepdims=True)
  h = (h - mu) / jnp.sqrt(var + 1e-5) * p["gamma"] + p["beta"]
  return h @ p["w2"] + p["b2"]


def ref_forward(params, tx, ta, te, px, pa, pe):
  joint = jnp.concatenate(
      [ref_gnn(tx, ta, te, params["task_gnn"]), ref_gnn(px, pa, pe, params["phys_gnn"])], axis=1)
  tl = ref_head(joint, params["task_head"])
  bw = ref_head(joint, params["bw_head"])
  ps = ref_head(joint, params["path_head"])
  v = ref_head(joint, params["value_head"])
  return tl, jax.nn.sigmoid(bw[:, 0]), jnp.exp(bw[:, 1]) + 1e-6, ps, v


# ----------------------------------------------------------------------------
if __name__ == "__main__":
  config = dict(task_node_dim=6, task_edge_dim=4,
                phys_node_dim=5, phys_edge_dim=3,
                gnn_hidden_dim=32, num_phys_nodes=8)
  B, Nt, Np = 2, 8, 8
  H = config["gnn_hidden_dim"]

  key = jax.random.PRNGKey(0)
  (k_tg, k_pg, k_th, k_bh, k_ph, k_vh,
   k_tx, k_ta, k_te, k_px, k_pa, k_pe) = jax.random.split(key, 12)

  raw_params = dict(
      task_gnn=init_gnn(k_tg, config["task_node_dim"], config["task_edge_dim"], H),
      phys_gnn=init_gnn(k_pg, config["phys_node_dim"], config["phys_edge_dim"], H),
      task_head=init_head(k_th, 2 * H, config["num_phys_nodes"]),
      bw_head=init_head(k_bh, 2 * H, 2),
      path_head=init_head(k_ph, 2 * H, 1),
      value_head=init_head(k_vh, 2 * H, 1))

  fused_params = pack_params(raw_params, Nt, config["task_edge_dim"],
                             Np, config["phys_edge_dim"], config["num_phys_nodes"])

  # deterministic example graph inputs
  task_x = jax.random.normal(k_tx, (B, Nt, config["task_node_dim"]), jnp.float32)
  task_adj = (jax.random.uniform(k_ta, (B, Nt, Nt)) > 0.5).astype(jnp.float32)
  task_e = jax.random.normal(k_te, (B, Nt, Nt, config["task_edge_dim"]), jnp.float32)
  phys_x = jax.random.normal(k_px, (B, Np, config["phys_node_dim"]), jnp.float32)
  phys_adj = (jax.random.uniform(k_pa, (B, Np, Np)) > 0.5).astype(jnp.float32)
  phys_e = jax.random.normal(k_pe, (B, Np, Np, config["phys_edge_dim"]), jnp.float32)

  fwd = jax.jit(functools.partial(policy_forward, fused_params, config["num_phys_nodes"]))
  outs = jax.block_until_ready(fwd(task_x, task_adj, task_e, phys_x, phys_adj, phys_e))

  refs = ref_forward(raw_params, task_x, task_adj, task_e, phys_x, phys_adj, phys_e)
  for o, r in zip(outs, refs):
    np.testing.assert_allclose(np.asarray(o), np.asarray(r), rtol=2e-4, atol=2e-4)

  print("KERNEL_OK")
</pallas_src>

<mosaic_0001>
module attributes {stable_mosaic.version = 11 : i64} {
  func.func @policy_fused_kernel(%arg0: memref<2x8x6xf32, #tpu.memory_space<vmem>>, %arg1: memref<2x8x8xf32, #tpu.memory_space<vmem>>, %arg2: memref<2x8x32xf32, #tpu.memory_space<vmem>>, %arg3: memref<2x8x5xf32, #tpu.memory_space<vmem>>, %arg4: memref<2x8x8xf32, #tpu.memory_space<vmem>>, %arg5: memref<2x8x24xf32, #tpu.memory_space<vmem>>, %arg6: memref<6x32xf32, #tpu.memory_space<vmem>>, %arg7: memref<6x32xf32, #tpu.memory_space<vmem>>, %arg8: memref<8x32xf32, #tpu.memory_space<vmem>>, %arg9: memref<32x32xf32, #tpu.memory_space<vmem>>, %arg10: memref<1x32xf32, #tpu.memory_space<vmem>>, %arg11: memref<5x32xf32, #tpu.memory_space<vmem>>, %arg12: memref<5x32xf32, #tpu.memory_space<vmem>>, %arg13: memref<8x24xf32, #tpu.memory_space<vmem>>, %arg14: memref<24x32xf32, #tpu.memory_space<vmem>>, %arg15: memref<1x32xf32, #tpu.memory_space<vmem>>, %arg16: memref<32x1024xf32, #tpu.memory_space<vmem>>, %arg17: memref<32x1024xf32, #tpu.memory_space<vmem>>, %arg18: memref<1x1024xf32, #tpu.memory_space<vmem>>, %arg19: memref<1x1024xf32, #tpu.memory_space<vmem>>, %arg20: memref<1x1024xf32, #tpu.memory_space<vmem>>, %arg21: memref<1024x128xf32, #tpu.memory_space<vmem>>, %arg22: memref<1x128xf32, #tpu.memory_space<vmem>>, %arg23: memref<2x128xf32, #tpu.memory_space<vmem>>, %arg24: memref<2x32xf32, #tpu.memory_space<vmem>>, %arg25: memref<2x32xf32, #tpu.memory_space<vmem>>) attributes {dimension_semantics = [], scalar_prefetch = 0 : i64, scratch_operands = 2 : i64, tpu.core_type = #tpu.core_type<tc>} {
    %c0 = arith.constant 0 : index
    %c0_0 = arith.constant 0 : index
    %c0_1 = arith.constant 0 : index
    %0 = vector.load %arg0[%c0, %c0_0, %c0_1] : memref<2x8x6xf32, #tpu.memory_space<vmem>>, vector<1x8x6xf32>
    %1 = vector.shape_cast %0 : vector<1x8x6xf32> to vector<8x6xf32>
    %c0_2 = arith.constant 0 : index
    %c0_3 = arith.constant 0 : index
    %c0_4 = arith.constant 0 : index
    %2 = vector.load %arg1[%c0_2, %c0_3, %c0_4] : memref<2x8x8xf32, #tpu.memory_space<vmem>>, vector<1x8x8xf32>
    %3 = vector.shape_cast %2 : vector<1x8x8xf32> to vector<8x8xf32>
    %c0_5 = arith.constant 0 : index
    %c0_6 = arith.constant 0 : index
    %c0_7 = arith.constant 0 : index
    %4 = vector.load %arg2[%c0_5, %c0_6, %c0_7] : memref<2x8x32xf32, #tpu.memory_space<vmem>>, vector<1x8x32xf32>
    %5 = vector.shape_cast %4 : vector<1x8x32xf32> to vector<8x32xf32>
    %cst = arith.constant dense<0.000000e+00> : vector<8x6xf32>
    %6 = tpu.matmul %3, %1, %cst {dimension_numbers = #tpu.dot_dimension_numbers<[1], [0], [0], [1], [0, 0, 1, 1], [], []>} : vector<8x8xf32>, vector<8x6xf32>, vector<8x6xf32> -> vector<8x6xf32>
    %c0_8 = arith.constant 0 : index
    %c0_9 = arith.constant 0 : index
    %7 = vector.load %arg8[%c0_8, %c0_9] : memref<8x32xf32, #tpu.memory_space<vmem>>, vector<8x32xf32>
    %cst_10 = arith.constant dense<0.000000e+00> : vector<8x32xf32>
    %8 = tpu.matmul %3, %7, %cst_10 {dimension_numbers = #tpu.dot_dimension_numbers<[1], [0], [0], [1], [0, 0, 1, 1], [], []>} : vector<8x8xf32>, vector<8x32xf32>, vector<8x32xf32> -> vector<8x32xf32>
    %c0_11 = arith.constant 0 : index
    %c0_12 = arith.constant 0 : index
    %9 = vector.load %arg6[%c0_11, %c0_12] : memref<6x32xf32, #tpu.memory_space<vmem>>, vector<6x32xf32>
    %cst_13 = arith.constant dense<0.000000e+00> : vector<8x32xf32>
    %10 = tpu.matmul %1, %9, %cst_13 {dimension_numbers = #tpu.dot_dimension_numbers<[1], [0], [0], [1], [0, 0, 1, 1], [], []>} : vector<8x6xf32>, vector<6x32xf32>, vector<8x32xf32> -> vector<8x32xf32>
    %c0_14 = arith.constant 0 : index
    %c0_15 = arith.constant 0 : index
    %11 = vector.load %arg7[%c0_14, %c0_15] : memref<6x32xf32, #tpu.memory_space<vmem>>, vector<6x32xf32>
    %cst_16 = arith.constant dense<0.000000e+00> : vector<8x32xf32>
    %12 = tpu.matmul %6, %11, %cst_16 {dimension_numbers = #tpu.dot_dimension_numbers<[1], [0], [0], [1], [0, 0, 1, 1], [], []>} : vector<8x6xf32>, vector<6x32xf32>, vector<8x32xf32> -> vector<8x32xf32>
    %13 = arith.addf %10, %12 : vector<8x32xf32>
    %14 = arith.mulf %8, %5 : vector<8x32xf32>
    %c0_17 = arith.constant 0 : index
    %c0_18 = arith.constant 0 : index
    %15 = vector.load %arg9[%c0_17, %c0_18] : memref<32x32xf32, #tpu.memory_space<vmem>>, vector<32x32xf32>
    %cst_19 = arith.constant dense<0.000000e+00> : vector<8x32xf32>
    %16 = tpu.matmul %14, %15, %cst_19 {dimension_numbers = #tpu.dot_dimension_numbers<[1], [0], [0], [1], [0, 0, 1, 1], [], []>} : vector<8x32xf32>, vector<32x32xf32>, vector<8x32xf32> -> vector<8x32xf32>
    %17 = arith.addf %13, %16 : vector<8x32xf32>
    %c0_20 = arith.constant 0 : index
    %c0_21 = arith.constant 0 : index
    %18 = vector.load %arg10[%c0_20, %c0_21] : memref<1x32xf32, #tpu.memory_space<vmem>>, vector<1x32xf32>
    %19 = vector.broadcast %18 : vector<1x32xf32> to vector<8x32xf32>
    %20 = arith.addf %17, %19 : vector<8x32xf32>
    %cst_22 = arith.constant 0.000000e+00 : f32
    %21 = vector.broadcast %cst_22 : f32 to vector<8x32xf32>
    %22 = arith.maximumf %20, %21 : vector<8x32xf32>
    %cst_23 = arith.constant dense<0.000000e+00> : vector<32xf32>
    %23 = vector.multi_reduction <add>, %22, %cst_23 [0] : vector<8x32xf32> to vector<32xf32>
    %24 = vector.shape_cast %23 : vector<32xf32> to vector<1x32xf32>
    %cst_24 = arith.constant 8.000000e+00 : f32
    %25 = vector.broadcast %cst_24 : f32 to vector<1x32xf32>
    %26 = arith.divf %24, %25 : vector<1x32xf32>
    %c0_25 = arith.constant 0 : index
    %c0_26 = arith.constant 0 : index
    %27 = vector.load %arg24[%c0_25, %c0_26] : memref<2x32xf32, #tpu.memory_space<vmem>>, vector<1x32xf32>
    tpu.vector_store %arg24[%c0_25, %c0_26], %26 {strides = array<i32>} : memref<2x32xf32, #tpu.memory_space<vmem>>, vector<1x32xf32>,
    %c0_27 = arith.constant 0 : index
    %c0_28 = arith.constant 0 : index
    %c0_29 = arith.constant 0 : index
    %28 = vector.load %arg3[%c0_27, %c0_28, %c0_29] : memref<2x8x5xf32, #tpu.memory_space<vmem>>, vector<1x8x5xf32>
    %29 = vector.shape_cast %28 : vector<1x8x5xf32> to vector<8x5xf32>
    %c0_30 = arith.constant 0 : index
    %c0_31 = arith.constant 0 : index
    %c0_32 = arith.constant 0 : index
    %30 = vector.load %arg4[%c0_30, %c0_31, %c0_32] : memref<2x8x8xf32, #tpu.memory_space<vmem>>, vector<1x8x8xf32>
    %31 = vector.shape_cast %30 : vector<1x8x8xf32> to vector<8x8xf32>
    %c0_33 = arith.constant 0 : index
    %c0_34 = arith.constant 0 : index
    %c0_35 = arith.constant 0 : index
    %32 = vector.load %arg5[%c0_33, %c0_34, %c0_35] : memref<2x8x24xf32, #tpu.memory_space<vmem>>, vector<1x8x24xf32>
    %33 = vector.shape_cast %32 : vector<1x8x24xf32> to vector<8x24xf32>
    %cst_36 = arith.constant dense<0.000000e+00> : vector<8x5xf32>
    %34 = tpu.matmul %31, %29, %cst_36 {dimension_numbers = #tpu.dot_dimension_numbers<[1], [0], [0], [1], [0, 0, 1, 1], [], []>} : vector<8x8xf32>, vector<8x5xf32>, vector<8x5xf32> -> vector<8x5xf32>
    %c0_37 = arith.constant 0 : index
    %c0_38 = arith.constant 0 : index
    %35 = vector.load %arg13[%c0_37, %c0_38] : memref<8x24xf32, #tpu.memory_space<vmem>>, vector<8x24xf32>
    %cst_39 = arith.constant dense<0.000000e+00> : vector<8x24xf32>
    %36 = tpu.matmul %31, %35, %cst_39 {dimension_numbers = #tpu.dot_dimension_numbers<[1], [0], [0], [1], [0, 0, 1, 1], [], []>} : vector<8x8xf32>, vector<8x24xf32>, vector<8x24xf32> -> vector<8x24xf32>
    %c0_40 = arith.constant 0 : index
    %c0_41 = arith.constant 0 : index
    %37 = vector.load %arg11[%c0_40, %c0_41] : memref<5x32xf32, #tpu.memory_space<vmem>>, vector<5x32xf32>
    %cst_42 = arith.constant dense<0.000000e+00> : vector<8x32xf32>
    %38 = tpu.matmul %29, %37, %cst_42 {dimension_numbers = #tpu.dot_dimension_numbers<[1], [0], [0], [1], [0, 0, 1, 1], [], []>} : vector<8x5xf32>, vector<5x32xf32>, vector<8x32xf32> -> vector<8x32xf32>
    %c0_43 = arith.constant 0 : index
    %c0_44 = arith.constant 0 : index
    %39 = vector.load %arg12[%c0_43, %c0_44] : memref<5x32xf32, #tpu.memory_space<vmem>>, vector<5x32xf32>
    %cst_45 = arith.constant dense<0.000000e+00> : vector<8x32xf32>
    %40 = tpu.matmul %34, %39, %cst_45 {dimension_numbers = #tpu.dot_dimension_numbers<[1], [0], [0], [1], [0, 0, 1, 1], [], []>} : vector<8x5xf32>, vector<5x32xf32>, vector<8x32xf32> -> vector<8x32xf32>
    %41 = arith.addf %38, %40 : vector<8x32xf32>
    %42 = arith.mulf %36, %33 : vector<8x24xf32>
    %c0_46 = arith.constant 0 : index
    %c0_47 = arith.constant 0 : index
    %43 = vector.load %arg14[%c0_46, %c0_47] : memref<24x32xf32, #tpu.memory_space<vmem>>, vector<24x32xf32>
    %cst_48 = arith.constant dense<0.000000e+00> : vector<8x32xf32>
    %44 = tpu.matmul %42, %43, %cst_48 {dimension_numbers = #tpu.dot_dimension_numbers<[1], [0], [0], [1], [0, 0, 1, 1], [], []>} : vector<8x24xf32>, vector<24x32xf32>, vector<8x32xf32> -> vector<8x32xf32>
    %45 = arith.addf %41, %44 : vector<8x32xf32>
    %c0_49 = arith.constant 0 : index
    %c0_50 = arith.constant 0 : index
    %46 = vector.load %arg15[%c0_49, %c0_50] : memref<1x32xf32, #tpu.memory_space<vmem>>, vector<1x32xf32>
    %47 = vector.broadcast %46 : vector<1x32xf32> to vector<8x32xf32>
    %48 = arith.addf %45, %47 : vector<8x32xf32>
    %cst_51 = arith.constant 0.000000e+00 : f32
    %49 = vector.broadcast %cst_51 : f32 to vector<8x32xf32>
    %50 = arith.maximumf %48, %49 : vector<8x32xf32>
    %cst_52 = arith.constant dense<0.000000e+00> : vector<32xf32>
    %51 = vector.multi_reduction <add>, %50, %cst_52 [0] : vector<8x32xf32> to vector<32xf32>
    %52 = vector.shape_cast %51 : vector<32xf32> to vector<1x32xf32>
    %cst_53 = arith.constant 8.000000e+00 : f32
    %53 = vector.broadcast %cst_53 : f32 to vector<1x32xf32>
    %54 = arith.divf %52, %53 : vector<1x32xf32>
    %c0_54 = arith.constant 0 : index
    %c0_55 = arith.constant 0 : index
    %55 = vector.load %arg25[%c0_54, %c0_55] : memref<2x32xf32, #tpu.memory_space<vmem>>, vector<1x32xf32>
    tpu.vector_store %arg25[%c0_54, %c0_55], %54 {strides = array<i32>} : memref<2x32xf32, #tpu.memory_space<vmem>>, vector<1x32xf32>,
    %c1 = arith.constant 1 : index
    %c0_56 = arith.constant 0 : index
    %c0_57 = arith.constant 0 : index
    %56 = vector.load %arg0[%c1, %c0_56, %c0_57] : memref<2x8x6xf32, #tpu.memory_space<vmem>>, vector<1x8x6xf32>
    %57 = vector.shape_cast %56 : vector<1x8x6xf32> to vector<8x6xf32>
    %c1_58 = arith.constant 1 : index
    %c0_59 = arith.constant 0 : index
    %c0_60 = arith.constant 0 : index
    %58 = vector.load %arg1[%c1_58, %c0_59, %c0_60] : memref<2x8x8xf32, #tpu.memory_space<vmem>>, vector<1x8x8xf32>
    %59 = vector.shape_cast %58 : vector<1x8x8xf32> to vector<8x8xf32>
    %c1_61 = arith.constant 1 : index
    %c0_62 = arith.constant 0 : index
    %c0_63 = arith.constant 0 : index
    %60 = vector.load %arg2[%c1_61, %c0_62, %c0_63] : memref<2x8x32xf32, #tpu.memory_space<vmem>>, vector<1x8x32xf32>
    %61 = vector.shape_cast %60 : vector<1x8x32xf32> to vector<8x32xf32>
    %cst_64 = arith.constant dense<0.000000e+00> : vector<8x6xf32>
    %62 = tpu.matmul %59, %57, %cst_64 {dimension_numbers = #tpu.dot_dimension_numbers<[1], [0], [0], [1], [0, 0, 1, 1], [], []>} : vector<8x8xf32>, vector<8x6xf32>, vector<8x6xf32> -> vector<8x6xf32>
    %c0_65 = arith.constant 0 : index
    %c0_66 = arith.constant 0 : index
    %63 = vector.load %arg8[%c0_65, %c0_66] : memref<8x32xf32, #tpu.memory_space<vmem>>, vector<8x32xf32>
    %cst_67 = arith.constant dense<0.000000e+00> : vector<8x32xf32>
    %64 = tpu.matmul %59, %63, %cst_67 {dimension_numbers = #tpu.dot_dimension_numbers<[1], [0], [0], [1], [0, 0, 1, 1], [], []>} : vector<8x8xf32>, vector<8x32xf32>, vector<8x32xf32> -> vector<8x32xf32>
    %c0_68 = arith.constant 0 : index
    %c0_69 = arith.constant 0 : index
    %65 = vector.load %arg6[%c0_68, %c0_69] : memref<6x32xf32, #tpu.memory_space<vmem>>, vector<6x32xf32>
    %cst_70 = arith.constant dense<0.000000e+00> : vector<8x32xf32>
    %66 = tpu.matmul %57, %65, %cst_70 {dimension_numbers = #tpu.dot_dimension_numbers<[1], [0], [0], [1], [0, 0, 1, 1], [], []>} : vector<8x6xf32>, vector<6x32xf32>, vector<8x32xf32> -> vector<8x32xf32>
    %c0_71 = arith.constant 0 : index
    %c0_72 = arith.constant 0 : index
    %67 = vector.load %arg7[%c0_71, %c0_72] : memref<6x32xf32, #tpu.memory_space<vmem>>, vector<6x32xf32>
    %cst_73 = arith.constant dense<0.000000e+00> : vector<8x32xf32>
    %68 = tpu.matmul %62, %67, %cst_73 {dimension_numbers = #tpu.dot_dimension_numbers<[1], [0], [0], [1], [0, 0, 1, 1], [], []>} : vector<8x6xf32>, vector<6x32xf32>, vector<8x32xf32> -> vector<8x32xf32>
    %69 = arith.addf %66, %68 : vector<8x32xf32>
    %70 = arith.mulf %64, %61 : vector<8x32xf32>
    %c0_74 = arith.constant 0 : index
    %c0_75 = arith.constant 0 : index
    %71 = vector.load %arg9[%c0_74, %c0_75] : memref<32x32xf32, #tpu.memory_space<vmem>>, vector<32x32xf32>
    %cst_76 = arith.constant dense<0.000000e+00> : vector<8x32xf32>
    %72 = tpu.matmul %70, %71, %cst_76 {dimension_numbers = #tpu.dot_dimension_numbers<[1], [0], [0], [1], [0, 0, 1, 1], [], []>} : vector<8x32xf32>, vector<32x32xf32>, vector<8x32xf32> -> vector<8x32xf32>
    %73 = arith.addf %69, %72 : vector<8x32xf32>
    %c0_77 = arith.constant 0 : index
    %c0_78 = arith.constant 0 : index
    %74 = vector.load %arg10[%c0_77, %c0_78] : memref<1x32xf32, #tpu.memory_space<vmem>>, vector<1x32xf32>
    %75 = vector.broadcast %74 : vector<1x32xf32> to vector<8x32xf32>
    %76 = arith.addf %73, %75 : vector<8x32xf32>
    %cst_79 = arith.constant 0.000000e+00 : f32
    %77 = vector.broadcast %cst_79 : f32 to vector<8x32xf32>
    %78 = arith.maximumf %76, %77 : vector<8x32xf32>
    %cst_80 = arith.constant dense<0.000000e+00> : vector<32xf32>
    %79 = vector.multi_reduction <add>, %78, %cst_80 [0] : vector<8x32xf32> to vector<32xf32>
    %80 = vector.shape_cast %79 : vector<32xf32> to vector<1x32xf32>
    %cst_81 = arith.constant 8.000000e+00 : f32
    %81 = vector.broadcast %cst_81 : f32 to vector<1x32xf32>
    %82 = arith.divf %80, %81 : vector<1x32xf32>
    %c1_82 = arith.constant 1 : index
    %c0_83 = arith.constant 0 : index
    %83 = vector.load %arg24[%c1_82, %c0_83] : memref<2x32xf32, #tpu.memory_space<vmem>>, vector<1x32xf32>
    tpu.vector_store %arg24[%c1_82, %c0_83], %82 {strides = array<i32>} : memref<2x32xf32, #tpu.memory_space<vmem>>, vector<1x32xf32>,
    %c1_84 = arith.constant 1 : index
    %c0_85 = arith.constant 0 : index
    %c0_86 = arith.constant 0 : index
    %84 = vector.load %arg3[%c1_84, %c0_85, %c0_86] : memref<2x8x5xf32, #tpu.memory_space<vmem>>, vector<1x8x5xf32>
    %85 = vector.shape_cast %84 : vector<1x8x5xf32> to vector<8x5xf32>
    %c1_87 = arith.constant 1 : index
    %c0_88 = arith.constant 0 : index
    %c0_89 = arith.constant 0 : index
    %86 = vector.load %arg4[%c1_87, %c0_88, %c0_89] : memref<2x8x8xf32, #tpu.memory_space<vmem>>, vector<1x8x8xf32>
    %87 = vector.shape_cast %86 : vector<1x8x8xf32> to vector<8x8xf32>
    %c1_90 = arith.constant 1 : index
    %c0_91 = arith.constant 0 : index
    %c0_92 = arith.constant 0 : index
    %88 = vector.load %arg5[%c1_90, %c0_91, %c0_92] : memref<2x8x24xf32, #tpu.memory_space<vmem>>, vector<1x8x24xf32>
    %89 = vector.shape_cast %88 : vector<1x8x24xf32> to vector<8x24xf32>
    %cst_93 = arith.constant dense<0.000000e+00> : vector<8x5xf32>
    %90 = tpu.matmul %87, %85, %cst_93 {dimension_numbers = #tpu.dot_dimension_numbers<[1], [0], [0], [1], [0, 0, 1, 1], [], []>} : vector<8x8xf32>, vector<8x5xf32>, vector<8x5xf32> -> vector<8x5xf32>
    %c0_94 = arith.constant 0 : index
    %c0_95 = arith.constant 0 : index
    %91 = vector.load %arg13[%c0_94, %c0_95] : memref<8x24xf32, #tpu.memory_space<vmem>>, vector<8x24xf32>
    %cst_96 = arith.constant dense<0.000000e+00> : vector<8x24xf32>
    %92 = tpu.matmul %87, %91, %cst_96 {dimension_numbers = #tpu.dot_dimension_numbers<[1], [0], [0], [1], [0, 0, 1, 1], [], []>} : vector<8x8xf32>, vector<8x24xf32>, vector<8x24xf32> -> vector<8x24xf32>
    %c0_97 = arith.constant 0 : index
    %c0_98 = arith.constant 0 : index
    %93 = vector.load %arg11[%c0_97, %c0_98] : memref<5x32xf32, #tpu.memory_space<vmem>>, vector<5x32xf32>
    %cst_99 = arith.constant dense<0.000000e+00> : vector<8x32xf32>
    %94 = tpu.matmul %85, %93, %cst_99 {dimension_numbers = #tpu.dot_dimension_numbers<[1], [0], [0], [1], [0, 0, 1, 1], [], []>} : vector<8x5xf32>, vector<5x32xf32>, vector<8x32xf32> -> vector<8x32xf32>
    %c0_100 = arith.constant 0 : index
    %c0_101 = arith.constant 0 : index
    %95 = vector.load %arg12[%c0_100, %c0_101] : memref<5x32xf32, #tpu.memory_space<vmem>>, vector<5x32xf32>
    %cst_102 = arith.constant dense<0.000000e+00> : vector<8x32xf32>
    %96 = tpu.matmul %90, %95, %cst_102 {dimension_numbers = #tpu.dot_dimension_numbers<[1], [0], [0], [1], [0, 0, 1, 1], [], []>} : vector<8x5xf32>, vector<5x32xf32>, vector<8x32xf32> -> vector<8x32xf32>
    %97 = arith.addf %94, %96 : vector<8x32xf32>
    %98 = arith.mulf %92, %89 : vector<8x24xf32>
    %c0_103 = arith.constant 0 : index
    %c0_104 = arith.constant 0 : index
    %99 = vector.load %arg14[%c0_103, %c0_104] : memref<24x32xf32, #tpu.memory_space<vmem>>, vector<24x32xf32>
    %cst_105 = arith.constant dense<0.000000e+00> : vector<8x32xf32>
    %100 = tpu.matmul %98, %99, %cst_105 {dimension_numbers = #tpu.dot_dimension_numbers<[1], [0], [0], [1], [0, 0, 1, 1], [], []>} : vector<8x24xf32>, vector<24x32xf32>, vector<8x32xf32> -> vector<8x32xf32>
    %101 = arith.addf %97, %100 : vector<8x32xf32>
    %c0_106 = arith.constant 0 : index
    %c0_107 = arith.constant 0 : index
    %102 = vector.load %arg15[%c0_106, %c0_107] : memref<1x32xf32, #tpu.memory_space<vmem>>, vector<1x32xf32>
    %103 = vector.broadcast %102 : vector<1x32xf32> to vector<8x32xf32>
    %104 = arith.addf %101, %103 : vector<8x32xf32>
    %cst_108 = arith.constant 0.000000e+00 : f32
    %105 = vector.broadcast %cst_108 : f32 to vector<8x32xf32>
    %106 = arith.maximumf %104, %105 : vector<8x32xf32>
    %cst_109 = arith.constant dense<0.000000e+00> : vector<32xf32>
    %107 = vector.multi_reduction <add>, %106, %cst_109 [0] : vector<8x32xf32> to vector<32xf32>
    %108 = vector.shape_cast %107 : vector<32xf32> to vector<1x32xf32>
    %cst_110 = arith.constant 8.000000e+00 : f32
    %109 = vector.broadcast %cst_110 : f32 to vector<1x32xf32>
    %110 = arith.divf %108, %109 : vector<1x32xf32>
    %c1_111 = arith.constant 1 : index
    %c0_112 = arith.constant 0 : index
    %111 = vector.load %arg25[%c1_111, %c0_112] : memref<2x32xf32, #tpu.memory_space<vmem>>, vector<1x32xf32>
    tpu.vector_store %arg25[%c1_111, %c0_112], %110 {strides = array<i32>} : memref<2x32xf32, #tpu.memory_space<vmem>>, vector<1x32xf32>,
    %c0_113 = arith.constant 0 : index
    %c0_114 = arith.constant 0 : index
    %112 = vector.load %arg24[%c0_113, %c0_114] : memref<2x32xf32, #tpu.memory_space<vmem>>, vector<2x32xf32>
    %c0_115 = arith.constant 0 : index
    %c0_116 = arith.constant 0 : index
    %113 = vector.load %arg16[%c0_115, %c0_116] : memref<32x1024xf32, #tpu.memory_space<vmem>>, vector<32x1024xf32>
    %cst_117 = arith.constant dense<0.000000e+00> : vector<2x1024xf32>
    %114 = tpu.matmul %112, %113, %cst_117 {dimension_numbers = #tpu.dot_dimension_numbers<[1], [0], [0], [1], [0, 0, 1, 1], [], []>} : vector<2x32xf32>, vector<32x1024xf32>, vector<2x1024xf32> -> vector<2x1024xf32>
    %c0_118 = arith.constant 0 : index
    %c0_119 = arith.constant 0 : index
    %115 = vector.load %arg25[%c0_118, %c0_119] : memref<2x32xf32, #tpu.memory_space<vmem>>, vector<2x32xf32>
    %c0_120 = arith.constant 0 : index
    %c0_121 = arith.constant 0 : index
    %116 = vector.load %arg17[%c0_120, %c0_121] : memref<32x1024xf32, #tpu.memory_space<vmem>>, vector<32x1024xf32>
    %cst_122 = arith.constant dense<0.000000e+00> : vector<2x1024xf32>
    %117 = tpu.matmul %115, %116, %cst_122 {dimension_numbers = #tpu.dot_dimension_numbers<[1], [0], [0], [1], [0, 0, 1, 1], [], []>} : vector<2x32xf32>, vector<32x1024xf32>, vector<2x1024xf32> -> vector<2x1024xf32>
    %118 = arith.addf %114, %117 : vector<2x1024xf32>
    %c0_123 = arith.constant 0 : index
    %c0_124 = arith.constant 0 : index
    %119 = vector.load %arg18[%c0_123, %c0_124] : memref<1x1024xf32, #tpu.memory_space<vmem>>, vector<1x1024xf32>
    %120 = vector.broadcast %119 : vector<1x1024xf32> to vector<2x1024xf32>
    %121 = arith.addf %118, %120 : vector<2x1024xf32>
    %cst_125 = arith.constant 0.000000e+00 : f32
    %122 = vector.broadcast %cst_125 : f32 to vector<2x1024xf32>
    %123 = arith.maximumf %121, %122 : vector<2x1024xf32>
    %cst_126 = arith.constant 0.000000e+00 : f32
    %124 = vector.broadcast %cst_126 : f32 to vector<2x128xf32>
    %c0_127 = arith.constant 0 : index
    %c0_128 = arith.constant 0 : index
    %125 = vector.load %arg22[%c0_127, %c0_128] : memref<1x128xf32, #tpu.memory_space<vmem>>, vector<1x128xf32>
    %126 = vector.broadcast %125 : vector<1x128xf32> to vector<2x128xf32>
    %127 = arith.addf %124, %126 : vector<2x128xf32>
    %128 = vector.extract_strided_slice %123 {offsets = [0, 0], sizes = [2, 256], strides = [1, 1]} : vector<2x1024xf32> to vector<2x256xf32>
    %cst_129 = arith.constant dense<0.000000e+00> : vector<2xf32>
    %129 = vector.multi_reduction <add>, %128, %cst_129 [1] : vector<2x256xf32> to vector<2xf32>
    %130 = vector.shape_cast %129 : vector<2xf32> to vector<2x1xf32>
    %cst_130 = arith.constant 2.560000e+02 : f32
    %131 = vector.broadcast %cst_130 : f32 to vector<2x1xf32>
    %132 = arith.divf %130, %131 : vector<2x1xf32>
    %133 = vector.broadcast %132 : vector<2x1xf32> to vector<2x256xf32>
    %134 = arith.subf %128, %133 : vector<2x256xf32>
    %135 = arith.mulf %134, %134 : vector<2x256xf32>
    %cst_131 = arith.constant dense<0.000000e+00> : vector<2xf32>
    %136 = vector.multi_reduction <add>, %135, %cst_131 [1] : vector<2x256xf32> to vector<2xf32>
    %137 = vector.shape_cast %136 : vector<2xf32> to vector<2x1xf32>
    %cst_132 = arith.constant 2.560000e+02 : f32
    %138 = vector.broadcast %cst_132 : f32 to vector<2x1xf32>
    %139 = arith.divf %137, %138 : vector<2x1xf32>
    %140 = vector.broadcast %132 : vector<2x1xf32> to vector<2x256xf32>
    %141 = arith.subf %128, %140 : vector<2x256xf32>
    %cst_133 = arith.constant 9.99999974E-6 : f32
    %142 = vector.broadcast %cst_133 : f32 to vector<2x1xf32>
    %143 = arith.addf %139, %142 : vector<2x1xf32>
    %144 = math.rsqrt %143 : vector<2x1xf32>
    %145 = vector.broadcast %144 : vector<2x1xf32> to vector<2x256xf32>
    %146 = arith.mulf %141, %145 : vector<2x256xf32>
    %c0_134 = arith.constant 0 : index
    %c0_135 = arith.constant 0 : index
    %147 = vector.load %arg19[%c0_134, %c0_135] : memref<1x1024xf32, #tpu.memory_space<vmem>>, vector<1x256xf32>
    %148 = vector.broadcast %147 : vector<1x256xf32> to vector<2x256xf32>
    %149 = arith.mulf %146, %148 : vector<2x256xf32>
    %c0_136 = arith.constant 0 : index
    %c0_137 = arith.constant 0 : index
    %150 = vector.load %arg20[%c0_136, %c0_137] : memref<1x1024xf32, #tpu.memory_space<vmem>>, vector<1x256xf32>
    %151 = vector.broadcast %150 : vector<1x256xf32> to vector<2x256xf32>
    %152 = arith.addf %149, %151 : vector<2x256xf32>
    %c0_138 = arith.constant 0 : index
    %c0_139 = arith.constant 0 : index
    %153 = vector.load %arg21[%c0_138, %c0_139] : memref<1024x128xf32, #tpu.memory_space<vmem>>, vector<256x128xf32>
    %cst_140 = arith.constant dense<0.000000e+00> : vector<2x128xf32>
    %154 = tpu.matmul %152, %153, %cst_140 {dimension_numbers = #tpu.dot_dimension_numbers<[1], [0], [0], [1], [0, 0, 1, 1], [], []>} : vector<2x256xf32>, vector<256x128xf32>, vector<2x128xf32> -> vector<2x128xf32>
    %155 = arith.addf %127, %154 : vector<2x128xf32>
    %156 = vector.extract_strided_slice %123 {offsets = [0, 256], sizes = [2, 256], strides = [1, 1]} : vector<2x1024xf32> to vector<2x256xf32>
    %cst_141 = arith.constant dense<0.000000e+00> : vector<2xf32>
    %157 = vector.multi_reduction <add>, %156, %cst_141 [1] : vector<2x256xf32> to vector<2xf32>
    %158 = vector.shape_cast %157 : vector<2xf32> to vector<2x1xf32>
    %cst_142 = arith.constant 2.560000e+02 : f32
    %159 = vector.broadcast %cst_142 : f32 to vector<2x1xf32>
    %160 = arith.divf %158, %159 : vector<2x1xf32>
    %161 = vector.broadcast %160 : vector<2x1xf32> to vector<2x256xf32>
    %162 = arith.subf %156, %161 : vector<2x256xf32>
    %163 = arith.mulf %162, %162 : vector<2x256xf32>
    %cst_143 = arith.constant dense<0.000000e+00> : vector<2xf32>
    %164 = vector.multi_reduction <add>, %163, %cst_143 [1] : vector<2x256xf32> to vector<2xf32>
    %165 = vector.shape_cast %164 : vector<2xf32> to vector<2x1xf32>
    %cst_144 = arith.constant 2.560000e+02 : f32
    %166 = vector.broadcast %cst_144 : f32 to vector<2x1xf32>
    %167 = arith.divf %165, %166 : vector<2x1xf32>
    %168 = vector.broadcast %160 : vector<2x1xf32> to vector<2x256xf32>
    %169 = arith.subf %156, %168 : vector<2x256xf32>
    %cst_145 = arith.constant 9.99999974E-6 : f32
    %170 = vector.broadcast %cst_145 : f32 to vector<2x1xf32>
    %171 = arith.addf %167, %170 : vector<2x1xf32>
    %172 = math.rsqrt %171 : vector<2x1xf32>
    %173 = vector.broadcast %172 : vector<2x1xf32> to vector<2x256xf32>
    %174 = arith.mulf %169, %173 : vector<2x256xf32>
    %c0_146 = arith.constant 0 : index
    %c256 = arith.constant 256 : index
    %175 = vector.load %arg19[%c0_146, %c256] : memref<1x1024xf32, #tpu.memory_space<vmem>>, vector<1x256xf32>
    %176 = vector.broadcast %175 : vector<1x256xf32> to vector<2x256xf32>
    %177 = arith.mulf %174, %176 : vector<2x256xf32>
    %c0_147 = arith.constant 0 : index
    %c256_148 = arith.constant 256 : index
    %178 = vector.load %arg20[%c0_147, %c256_148] : memref<1x1024xf32, #tpu.memory_space<vmem>>, vector<1x256xf32>
    %179 = vector.broadcast %178 : vector<1x256xf32> to vector<2x256xf32>
    %180 = arith.addf %177, %179 : vector<2x256xf32>
    %c256_149 = arith.constant 256 : index
    %c0_150 = arith.constant 0 : index
    %181 = vector.load %arg21[%c256_149, %c0_150] : memref<1024x128xf32, #tpu.memory_space<vmem>>, vector<256x128xf32>
    %cst_151 = arith.constant dense<0.000000e+00> : vector<2x128xf32>
    %182 = tpu.matmul %180, %181, %cst_151 {dimension_numbers = #tpu.dot_dimension_numbers<[1], [0], [0], [1], [0, 0, 1, 1], [], []>} : vector<2x256xf32>, vector<256x128xf32>, vector<2x128xf32> -> vector<2x128xf32>
    %183 = arith.addf %155, %182 : vector<2x128xf32>
    %184 = vector.extract_strided_slice %123 {offsets = [0, 512], sizes = [2, 256], strides = [1, 1]} : vector<2x1024xf32> to vector<2x256xf32>
    %cst_152 = arith.constant dense<0.000000e+00> : vector<2xf32>
    %185 = vector.multi_reduction <add>, %184, %cst_152 [1] : vector<2x256xf32> to vector<2xf32>
    %186 = vector.shape_cast %185 : vector<2xf32> to vector<2x1xf32>
    %cst_153 = arith.constant 2.560000e+02 : f32
    %187 = vector.broadcast %cst_153 : f32 to vector<2x1xf32>
    %188 = arith.divf %186, %187 : vector<2x1xf32>
    %189 = vector.broadcast %188 : vector<2x1xf32> to vector<2x256xf32>
    %190 = arith.subf %184, %189 : vector<2x256xf32>
    %191 = arith.mulf %190, %190 : vector<2x256xf32>
    %cst_154 = arith.constant dense<0.000000e+00> : vector<2xf32>
    %192 = vector.multi_reduction <add>, %191, %cst_154 [1] : vector<2x256xf32> to vector<2xf32>
    %193 = vector.shape_cast %192 : vector<2xf32> to vector<2x1xf32>
    %cst_155 = arith.constant 2.560000e+02 : f32
    %194 = vector.broadcast %cst_155 : f32 to vector<2x1xf32>
    %195 = arith.divf %193, %194 : vector<2x1xf32>
    %196 = vector.broadcast %188 : vector<2x1xf32> to vector<2x256xf32>
    %197 = arith.subf %184, %196 : vector<2x256xf32>
    %cst_156 = arith.constant 9.99999974E-6 : f32
    %198 = vector.broadcast %cst_156 : f32 to vector<2x1xf32>
    %199 = arith.addf %195, %198 : vector<2x1xf32>
    %200 = math.rsqrt %199 : vector<2x1xf32>
    %201 = vector.broadcast %200 : vector<2x1xf32> to vector<2x256xf32>
    %202 = arith.mulf %197, %201 : vector<2x256xf32>
    %c0_157 = arith.constant 0 : index
    %c512 = arith.constant 512 : index
    %203 = vector.load %arg19[%c0_157, %c512] : memref<1x1024xf32, #tpu.memory_space<vmem>>, vector<1x256xf32>
    %204 = vector.broadcast %203 : vector<1x256xf32> to vector<2x256xf32>
    %205 = arith.mulf %202, %204 : vector<2x256xf32>
    %c0_158 = arith.constant 0 : index
    %c512_159 = arith.constant 512 : index
    %206 = vector.load %arg20[%c0_158, %c512_159] : memref<1x1024xf32, #tpu.memory_space<vmem>>, vector<1x256xf32>
    %207 = vector.broadcast %206 : vector<1x256xf32> to vector<2x256xf32>
    %208 = arith.addf %205, %207 : vector<2x256xf32>
    %c512_160 = arith.constant 512 : index
    %c0_161 = arith.constant 0 : index
    %209 = vector.load %arg21[%c512_160, %c0_161] : memref<1024x128xf32, #tpu.memory_space<vmem>>, vector<256x128xf32>
    %cst_162 = arith.constant dense<0.000000e+00> : vector<2x128xf32>
    %210 = tpu.matmul %208, %209, %cst_162 {dimension_numbers = #tpu.dot_dimension_numbers<[1], [0], [0], [1], [0, 0, 1, 1], [], []>} : vector<2x256xf32>, vector<256x128xf32>, vector<2x128xf32> -> vector<2x128xf32>
    %211 = arith.addf %183, %210 : vector<2x128xf32>
    %212 = vector.extract_strided_slice %123 {offsets = [0, 768], sizes = [2, 256], strides = [1, 1]} : vector<2x1024xf32> to vector<2x256xf32>
    %cst_163 = arith.constant dense<0.000000e+00> : vector<2xf32>
    %213 = vector.multi_reduction <add>, %212, %cst_163 [1] : vector<2x256xf32> to vector<2xf32>
    %214 = vector.shape_cast %213 : vector<2xf32> to vector<2x1xf32>
    %cst_164 = arith.constant 2.560000e+02 : f32
    %215 = vector.broadcast %cst_164 : f32 to vector<2x1xf32>
    %216 = arith.divf %214, %215 : vector<2x1xf32>
    %217 = vector.broadcast %216 : vector<2x1xf32> to vector<2x256xf32>
    %218 = arith.subf %212, %217 : vector<2x256xf32>
    %219 = arith.mulf %218, %218 : vector<2x256xf32>
    %cst_165 = arith.constant dense<0.000000e+00> : vector<2xf32>
    %220 = vector.multi_reduction <add>, %219, %cst_165 [1] : vector<2x256xf32> to vector<2xf32>
    %221 = vector.shape_cast %220 : vector<2xf32> to vector<2x1xf32>
    %cst_166 = arith.constant 2.560000e+02 : f32
    %222 = vector.broadcast %cst_166 : f32 to vector<2x1xf32>
    %223 = arith.divf %221, %222 : vector<2x1xf32>
    %224 = vector.broadcast %216 : vector<2x1xf32> to vector<2x256xf32>
    %225 = arith.subf %212, %224 : vector<2x256xf32>
    %cst_167 = arith.constant 9.99999974E-6 : f32
    %226 = vector.broadcast %cst_167 : f32 to vector<2x1xf32>
    %227 = arith.addf %223, %226 : vector<2x1xf32>
    %228 = math.rsqrt %227 : vector<2x1xf32>
    %229 = vector.broadcast %228 : vector<2x1xf32> to vector<2x256xf32>
    %230 = arith.mulf %225, %229 : vector<2x256xf32>
    %c0_168 = arith.constant 0 : index
    %c768 = arith.constant 768 : index
    %231 = vector.load %arg19[%c0_168, %c768] : memref<1x1024xf32, #tpu.memory_space<vmem>>, vector<1x256xf32>
    %232 = vector.broadcast %231 : vector<1x256xf32> to vector<2x256xf32>
    %233 = arith.mulf %230, %232 : vector<2x256xf32>
    %c0_169 = arith.constant 0 : index
    %c768_170 = arith.constant 768 : index
    %234 = vector.load %arg20[%c0_169, %c768_170] : memref<1x1024xf32, #tpu.memory_space<vmem>>, vector<1x256xf32>
    %235 = vector.broadcast %234 : vector<1x256xf32> to vector<2x256xf32>
    %236 = arith.addf %233, %235 : vector<2x256xf32>
    %c768_171 = arith.constant 768 : index
    %c0_172 = arith.constant 0 : index
    %237 = vector.load %arg21[%c768_171, %c0_172] : memref<1024x128xf32, #tpu.memory_space<vmem>>, vector<256x128xf32>
    %cst_173 = arith.constant dense<0.000000e+00> : vector<2x128xf32>
    %238 = tpu.matmul %236, %237, %cst_173 {dimension_numbers = #tpu.dot_dimension_numbers<[1], [0], [0], [1], [0, 0, 1, 1], [], []>} : vector<2x256xf32>, vector<256x128xf32>, vector<2x128xf32> -> vector<2x128xf32>
    %239 = arith.addf %211, %238 : vector<2x128xf32>
    %240 = tpu.iota {dimensions = array<i32: 1>} : vector<2x128xi32>
    %c8_i32 = arith.constant 8 : i32
    %241 = vector.broadcast %c8_i32 : i32 to vector<2x128xi32>
    %242 = arith.cmpi eq, %240, %241 : vector<2x128xi32>
    %243 = arith.negf %239 : vector<2x128xf32>
    %244 = math.exp %243 : vector<2x128xf32>
    %cst_174 = arith.constant 1.000000e+00 : f32
    %245 = vector.broadcast %cst_174 : f32 to vector<2x128xf32>
    %246 = arith.addf %245, %244 : vector<2x128xf32>
    %247 = arith.divf %245, %246 : vector<2x128xf32>
    %c9_i32 = arith.constant 9 : i32
    %248 = vector.broadcast %c9_i32 : i32 to vector<2x128xi32>
    %249 = arith.cmpi eq, %240, %248 : vector<2x128xi32>
    %250 = math.exp %239 : vector<2x128xf32>
    %cst_175 = arith.constant 9.99999997E-7 : f32
    %251 = vector.broadcast %cst_175 : f32 to vector<2x128xf32>
    %252 = arith.addf %250, %251 : vector<2x128xf32>
    %253 = arith.select %249, %252, %239 : vector<2x128xi1>, vector<2x128xf32>
    %254 = arith.select %242, %247, %253 : vector<2x128xi1>, vector<2x128xf32>
    %c0_176 = arith.constant 0 : index
    %c0_177 = arith.constant 0 : index
    %255 = vector.load %arg23[%c0_176, %c0_177] : memref<2x128xf32, #tpu.memory_space<vmem>>, vector<2x128xf32>
    tpu.vector_store %arg23[%c0_176, %c0_177], %254 {strides = array<i32>} : memref<2x128xf32, #tpu.memory_space<vmem>>, vector<2x128xf32>,
    return
  }
}

</mosaic_0001>

<bundles_post_ra>
// kernel: policy_forward.1
= control target key start
LH: loop header
LB: loop body
LE: loop exit
PB: predicated region body
PF: predicated region fallthrough
CT: control target
= control target key end

     0   :  { %s4351_s0 = inlined_call_operand.vmem [shape: f32[2,8,6], index: 0, kind: input, shape index: {}]   ;;  %s4352_s1 = inlined_call_operand.vmem [shape: f32[2,8,8], index: 1, kind: input, shape index: {}]   ;;  %s4353_s2 = inlined_call_operand.vmem [shape: f32[2,8,32], index: 2, kind: input, shape index: {}]   ;;  %s4354_s3 = inlined_call_operand.vmem [shape: f32[2,8,5], index: 3, kind: input, shape index: {}]   ;;  %s4355_s4 = inlined_call_operand.vmem [shape: f32[2,8,8], index: 4, kind: input, shape index: {}]   ;;  %s4356_s5 = inlined_call_operand.vmem [shape: f32[2,8,24], index: 5, kind: input, shape index: {}]   ;;  %s4357_s6 = inlined_call_operand.vmem [shape: f32[6,32], index: 6, kind: input, shape index: {}]   ;;  %s4358_s7 = inlined_call_operand.vmem [shape: f32[6,32], index: 7, kind: input, shape index: {}]   ;;  %s4359_s8 = inlined_call_operand.vmem [shape: f32[8,32], index: 8, kind: input, shape index: {}]   ;;  %s4360_s9 = inlined_call_operand.vmem [shape: f32[32,32], index: 9, kind: input, shape index: {}]   ;;  %s4361_s10 = inlined_call_operand.vmem [shape: f32[1,32], index: 10, kind: input, shape index: {}, may-alias: {10,15}]   ;;  %s4362_s11 = inlined_call_operand.vmem [shape: f32[5,32], index: 11, kind: input, shape index: {}]   ;;  %s4363_s12 = inlined_call_operand.vmem [shape: f32[5,32], index: 12, kind: input, shape index: {}]   ;;  %s4364_s13 = inlined_call_operand.vmem [shape: f32[8,24], index: 13, kind: input, shape index: {}]   ;;  %s4365_s14 = inlined_call_operand.vmem [shape: f32[24,32], index: 14, kind: input, shape index: {}]   ;;  %s4366_s15 = inlined_call_operand.vmem [shape: f32[1,32], index: 15, kind: input, shape index: {}, may-alias: {10,15}]   ;;  %s4367_s16 = inlined_call_operand.vmem [shape: f32[32,1024], index: 16, kind: input, shape index: {}]   ;;  %s4368_s17 = inlined_call_operand.hbm [shape: f32[32,1024], index: 17, kind: input, shape index: {}]   ;;  %s4369_s18 = inlined_call_operand.vmem [shape: f32[1,1024], index: 18, kind: input, shape index: {}, may-alias: {18,20}]   ;;  %s4370_s19 = inlined_call_operand.vmem [shape: f32[1,1024], index: 19, kind: input, shape index: {}]   ;;  %s4371_s20 = inlined_call_operand.vmem [shape: f32[1,1024], index: 20, kind: input, shape index: {}, may-alias: {18,20}]   ;;  %s4372_s21 = inlined_call_operand.hbm [shape: f32[1024,128], index: 21, kind: input, shape index: {}]   ;;  %s4373_s22 = inlined_call_operand.vmem [shape: f32[1,128], index: 22, kind: input, shape index: {}]   ;;  %s4374_s23 = inlined_call_operand.vmem [shape: f32[2,128], index: 23, kind: output, shape index: {}]  }
   0x1   :  { %4383 = sst [smem:[#allocation10_spill]] %s4351_s0 }
   0x2   :  { %4384 = sst [smem:[#allocation11_spill]] %s4352_s1 }
   0x3   :  { %4385 = sst [smem:[#allocation12_spill]] %s4353_s2 }
   0x4   :  { %4386 = sst [smem:[#allocation13_spill]] %s4354_s3 }
   0x5   :  { %4387 = sst [smem:[#allocation14_spill]] %s4355_s4 }
   0x6   :  { %4388 = sst [smem:[#allocation15_spill]] %s4356_s5 }
   0x7   :  { %4389 = sst [smem:[#allocation16_spill]] %s4357_s6 }
   0x8   :  { %4390 = sst [smem:[#allocation17_spill]] %s4358_s7 }
   0x9   :  { %28 = vsyncpa [#allocation5], 0 }
   0xa   :  { %29 = vsyncpa [#allocation7], 0  ;;  %s3688_s4 = smov [#allocation4]   ;;  %s3640_s5 = scalar_lea.hbm %s4368_s17, 4096 }
   0xb   :  { %s69_s30 = sshll.u32 %s3688_s4, 4  ;;  %p3641_p0 = scmp.ne.s32.totalorder %s4368_s17, %s3640_s5  ;;  %s70_s30 = int_to_ptr.vmem [resolvable:$true] %s69_s30 }
   0xc   :  { %p3644_p1 = scmp.lt.u32.totalorder %s3640_s5, %s4368_s17 }
   0xe   :  { %p3646_p2 = pnand %p3644_p1, %p3641_p0 }
  0x10   :  { %3649 = shalt.err (!%p3646_p2)
}
  0x11   :  { %s3650_s27 = scalar_lea.vmem %s70_s30, 4096  ;;  %p3655_p4 = scmp.lt.s32.totalorder %s70_s30, %s70_s30 }
  0x12   :  { %p3651_p3 = scmp.ne.s32.totalorder %s70_s30, %s3650_s27  ;;  %p3656_p5 = scmp.lt.s32.totalorder %s3650_s27, %s3650_s27 }
  0x14   :  { %p3657_p6 = por %p3656_p5, %p3655_p4 }
  0x16   :  { %p3658_p7 = pnand %p3657_p6, %p3651_p3 }
  0x18   :  { %3661 = shalt.err (!%p3658_p7)
}
  0x19   :  { %s3689_s7 = smov 1024   ;;  %s3690_s28 = smov 64  }
  0x1a   :  { %75 = dma.hbm_to_vmem [thread:$0]  %s4368_s17, 4096, %s70_s30, [#allocation5], %s3689_s7, %s3689_s7, %s3690_s28  }
  0x1b   :  { %s3691_s0 = smov [#allocation6]   ;;  %s3662_s5 = scalar_lea.hbm %s4372_s21, 16384 }
  0x1c   :  { %s87_s4 = sshll.u32 %s3691_s0, 4  ;;  %p3663_p8 = scmp.ne.s32.totalorder %s4372_s21, %s3662_s5  ;;  %s88_s4 = int_to_ptr.vmem [resolvable:$true] %s87_s4 }
  0x1d   :  { %p3666_p9 = scmp.lt.u32.totalorder %s3662_s5, %s4372_s21 }
  0x1f   :  { %p3668_p10 = pnand %p3666_p9, %p3663_p8 }
  0x21   :  { %3671 = shalt.err (!%p3668_p10)
}
  0x22   :  { %s3672_s27 = scalar_lea.vmem %s88_s4, 16384  ;;  %p3677_p12 = scmp.lt.s32.totalorder %s88_s4, %s88_s4 }
  0x23   :  { %p3673_p11 = scmp.ne.s32.totalorder %s88_s4, %s3672_s27  ;;  %p3678_p13 = scmp.lt.s32.totalorder %s3672_s27, %s3672_s27 }
  0x25   :  { %p3679_p0 = por %p3678_p13, %p3677_p12 }
  0x27   :  { %p3680_p1 = pnand %p3679_p0, %p3673_p11 }
  0x29   :  { %3683 = shalt.err (!%p3680_p1)
}
  0x2a   :  { %s3692_s17 = smov 128   ;;  %s3693_s30 = smov 8  }
  0x2b   :  { %93 = dma.hbm_to_vmem [thread:$0]  %s4372_s21, 16384, %s88_s4, [#allocation7], %s3692_s17, %s3692_s17, %s3693_s30  }
  0x2c   :  { %3684 = dma.done.wait [#allocation5], 4096  }
  0x2d   :  { %3685 = vsyncadd [#allocation5], 4294963200 }
  0x2e   :  { %3686 = dma.done.wait [#allocation7], 16384  }
  0x2f   :  { %3687 = vsyncadd [#allocation7], 4294950912  ;;  %v3694_v0 = vmov 0.0   ;;  %vm3695_vm0 = vmmov 0   ;;  %vm105_vm1 = vcmask 64512   ;;  %s4391_s21 = sld [smem:[#allocation10_spill]] }
  0x30   :  { %3279 = vmatprep.subr.mxu0 %v3694_v0  ;;  %3284 = vmatprep.subr.mxu1 %v3694_v0  ;;  %v179_v2 = vld [vmem:[%s4359_s8] sm:$0xff]  ;;  %s4392_s5 = sld [smem:[#allocation11_spill]]  ;;  %s4393_s2 = sld [smem:[#allocation16_spill]]  ;;  %vm256_vm2 = vcmask 1045504   ;;  %vm252_vm3 = vcmask 48128   ;;  %vm659_vm4 = vcmask 1044480  }
  0x31   :  { %3281 = vmatprep.mubr.msk.f32.mxu0 %vm3695_vm0, %v3694_v0  ;;  %3286 = vmatprep.mubr.msk.f32.mxu1 %vm3695_vm0, %v3694_v0  ;;  %s4394_s27 = sld [smem:[#allocation13_spill]]  ;;  %s4395_s7 = sld [smem:[#allocation17_spill]]  ;;  %v582_v8 = vld [vmem:[%s4364_s13] sm:$0xff]  ;;  %vm655_vm5 = vcmask 39936   ;;  %v3696_v15 = vmov 0.0|0.0   ;;  %v408_v18 = vld [vmem:[%s4360_s9 + $0x8] sm:$0xff] }
  0x32   :  { %3285 = vmatpush3.msra.mxu1 %v179_v2  ;;  %s4396_s3 = sld [smem:[#allocation14_spill]]  ;;  %v653_v9 = vld [vmem:[%s4362_s11] sm:$0x1f]  ;;  %v409_v20 = vld [vmem:[%s4360_s9 + $0x10] sm:$0xff]  ;;  %v410_v21 = vld [vmem:[%s4360_s9 + $0x18] sm:$0xff]  ;;  %s4397_s8 = sld [smem:[#allocation12_spill]] }
  0x33   :  { %3294 = vmatprep.subr.mxu1 %v3694_v0  ;;  %v1457_v16 = vld [vmem:[%s4362_s11] sm:$0x1f]  ;;  %v3403_v26 = vpack.c.bf16 %v410_v21, %v409_v20  ;;  %vm411_vm6 = vcmask 261120   ;;  %v811_v33 = vld [vmem:[%s4365_s14 + $0x8] sm:$0xff]  ;;  %s4398_s28 = sld [smem:[#allocation15_spill]]  ;;  %v812_v40 = vld [vmem:[%s4365_s14 + $0x10] sm:$0xff] }
  0x34   :  { %v407_v17 = vld [vmem:[%s4360_s9] sm:$0xff]  ;;  %vm813_vm7 = vcmask 195584   ;;  %v1742_v62 = vld [vmem:[#allocation4 + $0x8] sm:$0xff]  ;;  %v1759_v20 = vld [vmem:[#allocation4 + $0x90] sm:$0xff]  ;;  %vm504_vm8 = vcmask 253952   ;;  %vm2413_vm9 = vcmask 1041408  }
  0x35   :  { %v102_v1 = vld [vmem:[%s4391_s21] sm:$0xff]  ;;  %v3057_v10 = vld [vmem:[%s4391_s21 + $0x8] sm:$0xff]  ;;  %v3400_v19 = vpack.c.bf16 %v408_v18, %v407_v17  ;;  %v1767_v21 = vld [vmem:[#allocation4 + $0xd0] sm:$0xff] }
  0x36   :  { %v103_v3 = vld [vmem:[%s4392_s5] sm:$0xff]  ;;  %3280 = vmatpush3.msra.mxu0 %v102_v1  ;;  %v3058_v11 = vld [vmem:[%s4392_s5 + $0x8] sm:$0xff] }
  0x37   :  { %v250_v4 = vld [vmem:[%s4393_s2] sm:$0x3f]  ;;  %3282 = vmatmul.mubr.msk.f32.vlgmr.msra.gmra.mrb[0].mxu0 %vm105_vm1, %v103_v3  ;;  %3287 = vmatmul.mubr.msk.f32.vlgmr.msra.gmra.mrb[0].mxu1 %vm105_vm1, %v103_v3  ;;  %v3068_v13 = vld [vmem:[%s4394_s27 + $0x8] sm:$0xff] }
  0x38   :  { %3296 = vmatprep.mubr.msk.f32.mxu1 %vm3695_vm0, %v3694_v0  ;;  %3295 = vmatpush3.msk.msra.mxu1 %vm256_vm2, %v250_v4  ;;  %v506_v5 = vld [vmem:[%s4394_s27] sm:$0xff]  ;;  %v3069_v14 = vld [vmem:[%s4396_s3 + $0x8] sm:$0xff] }
  0x39   :  { %3289 = vmatprep.subr.mxu0 %v3694_v0  ;;  %v251_v6 = vld [vmem:[%s4395_s7] sm:$0x3f]  ;;  %3310 = vmatprep.subr.mxu1 %v3694_v0  ;;  %v3059_v47 = vld [vmem:[%s4397_s8 + $0x8] sm:$0xff] }
  0x3a   :  { %3290 = vmatpush3.msk.msra.mxu0 %vm256_vm2, %v251_v6  ;;  %3291 = vmatprep.mubr.msk.f32.mxu0 %vm3695_vm0, %v3694_v0  ;;  %v507_v7 = vld [vmem:[%s4396_s3] sm:$0xff]  ;;  %v3070_v56 = vld [vmem:[%s4398_s28 + $0x8] sm:$0xff] }
  0x3b   :  { %3297 = vmatmul.mubr.msk.f32.vlgmr.msra.gmra.mrb[2].mxu1 %vm252_vm3, %v102_v1  ;;  %v1056_v12 = vld [vmem:[%s4393_s2] sm:$0x3f]  ;;  %3399 = vmatprep.subr.bf16.mxu0 %v3696_v15  ;;  %v1750_v63 = vld [vmem:[#allocation4 + $0x48] sm:$0xff] }
  0x3c   :  { %3311 = vmatpush3.msra.mxu1 %v506_v5  ;;  %3312 = vmatprep.mubr.msk.f32.mxu1 %vm3695_vm0, %v3694_v0  ;;  %v104_v27 = vld [vmem:[%s4397_s8] sm:$0xff] }
  0x3d   :  { %3315 = vmatprep.subr.mxu1 %v3694_v0  ;;  %v654_v31 = vld [vmem:[%s4363_s12] sm:$0x1f] }
  0x3e   :  { %v810_v32 = vld [vmem:[%s4365_s14] sm:$0xff] }
  0x3f   :  { %3313 = vmatmul.mubr.msk.f32.vlgmr.msra.gmra.mrb[4].mxu1 %vm105_vm1, %v507_v7  ;;  %v3406_v36 = vpack.c.bf16 %v811_v33, %v810_v32  ;;  %v508_v39 = vld [vmem:[%s4398_s28] sm:$0xff] }
  0x40   :  { %3316 = vmatpush3.msra.mxu1 %v582_v8  ;;  %3317 = vmatprep.mubr.msk.f32.mxu1 %vm3695_vm0, %v3694_v0  ;;  %v1057_v44 = vld [vmem:[%s4395_s7] sm:$0x3f] }
  0x41   :  { %3325 = vmatprep.subr.mxu1 %v3694_v0  ;;  %v1458_v53 = vld [vmem:[%s4363_s12] sm:$0x1f] }
  0x42   :  { %v1744_v1 = vld [vmem:[#allocation4 + $0x18] sm:$0xff]  ;;  %v1741_v4 = vld [vmem:[#allocation4] sm:$0xff] }
  0x43   :  { %3318 = vmatmul.mubr.msk.f32.vlgmr.msra.gmra.mrb[6].mxu1 %vm105_vm1, %v507_v7  ;;  %v1752_v3 = vld [vmem:[#allocation4 + $0x58] sm:$0xff]  ;;  %v1765_v17 = vld [vmem:[#allocation4 + $0xc0] sm:$0xff] }
  0x44   :  { %3326 = vmatpush3.msk.msra.mxu1 %vm659_vm4, %v653_v9  ;;  %3327 = vmatprep.mubr.msk.f32.mxu1 %vm3695_vm0, %v3694_v0  ;;  %v3425_v6 = vpack.c.bf16 %v1752_v3, %v1744_v1  ;;  %v1751_v9 = vld [vmem:[#allocation4 + $0x50] sm:$0xff] }
  0x45   :  { %3339 = vmatprep.subr.mxu1 %v3694_v0 }
  0x47   :  { %3328 = vmatmul.mubr.msk.f32.vlgmr.msra.gmra.mrb[8].mxu1 %vm655_vm5, %v506_v5  ;;  %v1749_v5 = vld [vmem:[#allocation4 + $0x40] sm:$0xff] }
  0x48   :  { %3340 = vmatpush3.msra.mxu1 %v3057_v10  ;;  %3341 = vmatprep.mubr.msk.f32.mxu1 %vm3695_vm0, %v3694_v0  ;;  %v3419_v7 = vpack.c.bf16 %v1749_v5, %v1741_v4 }
  0x49   :  { %3344 = vmatprep.subr.mxu1 %v3694_v0 }
  0x4b   :  { %3342 = vmatmul.mubr.msk.f32.vlgmr.msra.gmra.mrb[10].mxu1 %vm105_vm1, %v3058_v11 }
  0x4c   :  { %3345 = vmatpush3.msra.mxu1 %v179_v2  ;;  %3346 = vmatprep.mubr.msk.f32.mxu1 %vm3695_vm0, %v3694_v0  ;;  %v3417_v2 = vpack.c.bf16 %v1750_v63, %v1742_v62 }
  0x4d   :  { %3354 = vmatprep.subr.mxu1 %v3694_v0 }
  0x4f   :  { %3347 = vmatmul.mubr.msk.f32.vlgmr.msra.gmra.mrb[12].mxu1 %vm105_vm1, %v3058_v11  ;;  %v1758_v11 = vld [vmem:[#allocation4 + $0x88] sm:$0xff] }
  0x50   :  { %3355 = vmatpush3.msk.msra.mxu1 %vm256_vm2, %v1056_v12  ;;  %3356 = vmatprep.mubr.msk.f32.mxu1 %vm3695_vm0, %v3694_v0  ;;  %v1766_v12 = vld [vmem:[#allocation4 + $0xc8] sm:$0xff] }
  0x51   :  { %3370 = vmatprep.subr.mxu1 %v3694_v0 }
  0x53   :  { %3357 = vmatmul.mubr.msk.f32.vlgmr.msra.gmra.mrb[14].mxu1 %vm252_vm3, %v3057_v10 }
  0x54   :  { %3371 = vmatpush3.msra.mxu1 %v3068_v13  ;;  %3372 = vmatprep.mubr.msk.f32.mxu1 %vm3695_vm0, %v3694_v0 }
  0x55   :  { %3375 = vmatprep.subr.mxu1 %v3694_v0 }
  0x57   :  { %3373 = vmatmul.mubr.msk.f32.vlgmr.msra.gmra.mrb[16].mxu1 %vm105_vm1, %v3069_v14 }
  0x58   :  { %3376 = vmatpush3.msra.mxu1 %v582_v8  ;;  %3377 = vmatprep.mubr.msk.f32.mxu1 %vm3695_vm0, %v3694_v0  ;;  %v1743_v8 = vld [vmem:[#allocation4 + $0x10] sm:$0xff] }
  0x59   :  { %3385 = vmatprep.subr.mxu1 %v3694_v0  ;;  %v3427_v10 = vpack.c.bf16 %v1751_v9, %v1743_v8 }
  0x5b   :  { %3378 = vmatmul.mubr.msk.f32.vlgmr.msra.gmra.mrb[18].mxu1 %vm105_vm1, %v3069_v14  ;;  %v3421_v14 = vpack.c.bf16 %v1766_v12, %v1758_v11 }
  0x5c   :  { %3387 = vmatprep.mubr.msk.f32.mxu1 %vm3695_vm0, %v3694_v0  ;;  %3386 = vmatpush3.msk.msra.mxu1 %vm659_vm4, %v1457_v16  ;;  %v1757_v16 = vld [vmem:[#allocation4 + $0x80] sm:$0xff] }
  0x5d   :  { %3418 = vmatprep.subr.bf16.mxu1 %v3417_v2 }
  0x5f   :  { %3388 = vmatmul.mubr.msk.f32.vlgmr.msra.gmra.mrb[20].mxu1 %vm655_vm5, %v3068_v13  ;;  %v1760_v13 = vld [vmem:[#allocation4 + $0x98] sm:$0xff] }
  0x60   :  { %1840 = vmatprep.mubr.f32.mxu1 %v3694_v0  ;;  %3420 = vmatpush1.bf16.msra.mxu1 %v3419_v7 }
  0x61   :  { %3422 = vmatprep.subr.bf16.mxu1 %v3421_v14 }
 0x10a   :  { %v175_v22 = vpop.f32.mrb[0].mxu0  ;;  %v246_v23 = vpop.f32.mrb[0].mxu1 }
 0x10b   :  { %v3288_v24 = vpop.f32.mrb[1].mxu1  ;;  %3292 = vmatmul.mubr.msk.f32.vlgmr.msra.gmra.mrb[2].mxu0 %vm252_vm3, %v175_v22  ;;  %v3283_v25 = vpop.f32.mrb[1].mxu0  ;;  %v406_v30 = vmul.f32 %v246_v23, %v104_v27  ;;  %v1746_v22 = vld [vmem:[#allocation4 + $0x28] sm:$0xff]  ;;  %v3431_v23 = vpack.c.bf16 %v1767_v21, %v1759_v20 }
 0x10c   :  { %3401 = vmatpush3.bf16.msra.mxu0 %v3400_v19  ;;  %3307 = vmatprep.mubr.msk.f32.mxu0 %vm3695_vm0, %v3694_v0  ;;  %v1754_v24 = vld [vmem:[#allocation4 + $0x68] sm:$0xff]  ;;  %v1748_v25 = vld [vmem:[#allocation4 + $0x38] sm:$0xff] }
 0x10d   :  { %3402 = vmatprep.subr.bf16.mxu0 %v3696_v15  ;;  %v3433_v27 = vpack.c.bf16 %v1754_v24, %v1746_v22 }
 0x10e   :  { %v3963_v28 = vpop.f32.mrb[2].mxu1 }
 0x10f   :  { %v3298_v29 = vpop.f32.mrb[3].mxu1 }
 0x110   :  { %3404 = vmatpush3.bf16.msra.mxu0 %v3403_v26 }
 0x111   :  { %3320 = vmatprep.subr.mxu0 %v3694_v0 }
 0x112   :  { %v578_v34 = vpop.f32.mrb[4].mxu1 }
 0x113   :  { %3308 = vmatmul.mubr.msk.f32.vlgmr.msra.gmra.mrb[4].mxu0 %vm411_vm6, %v406_v30  ;;  %v3314_v35 = vpop.f32.mrb[5].mxu1 }
 0x114   :  { %3321 = vmatpush3.msk.msra.mxu0 %vm659_vm4, %v654_v31  ;;  %3322 = vmatprep.mubr.msk.f32.mxu0 %vm3695_vm0, %v3694_v0 }
 0x115   :  { %3405 = vmatprep.subr.bf16.mxu0 %v3696_v15 }
 0x116   :  { %v649_v37 = vpop.f32.mrb[6].mxu1 }
 0x117   :  { %3323 = vmatmul.mubr.msk.f32.vlgmr.msra.gmra.mrb[6].mxu0 %vm655_vm5, %v578_v34  ;;  %v3319_v38 = vpop.f32.mrb[7].mxu1  ;;  %v809_v42 = vmul.f32 %v649_v37, %v508_v39  ;;  %v3048_v34 = vld [vmem:[%s4361_s10] ss:$0 sm:$0xff] }
 0x118   :  { %3407 = vmatpush3.bf16.msra.mxu0 %v3406_v36  ;;  %3336 = vmatprep.mubr.msk.f32.mxu0 %vm3695_vm0, %v3694_v0 }
 0x119   :  { %3334 = vmatprep.subr.mxu0 %v3694_v0 }
 0x11a   :  { %v3990_v41 = vpop.f32.mrb[8].mxu1 }
 0x11b   :  { %v3329_v43 = vpop.f32.mrb[9].mxu1 }
 0x11c   :  { %3335 = vmatpush3.msra.mxu0 %v812_v40 }
 0x11d   :  { %3337 = vmatmul.mubr.msk.f32.vlgmr.msra.gmra.mrb[8].mxu0 %vm813_vm7, %v809_v42  ;;  %3349 = vmatprep.subr.mxu0 %v3694_v0 }
 0x11e   :  { %3350 = vmatpush3.msk.msra.mxu0 %vm256_vm2, %v1057_v44  ;;  %v981_v45 = vpop.f32.mrb[10].mxu1  ;;  %3351 = vmatprep.mubr.msk.f32.mxu0 %vm3695_vm0, %v3694_v0 }
 0x11f   :  { %3408 = vmatprep.subr.bf16.mxu0 %v3696_v15  ;;  %v3343_v46 = vpop.f32.mrb[11].mxu1 }
 0x121   :  { %3352 = vmatmul.mubr.msk.f32.vlgmr.msra.gmra.mrb[10].mxu0 %vm252_vm3, %v981_v45 }
 0x122   :  { %3410 = vmatpush3.bf16.msra.mxu0 %v3400_v19  ;;  %v1052_v48 = vpop.f32.mrb[12].mxu1  ;;  %3367 = vmatprep.mubr.msk.f32.mxu0 %vm3695_vm0, %v3694_v0  ;;  %v3423_v19 = vpack.c.bf16 %v1765_v17, %v1757_v16 }
 0x123   :  { %3411 = vmatprep.subr.bf16.mxu0 %v3696_v15  ;;  %v3348_v49 = vpop.f32.mrb[13].mxu1  ;;  %v1210_v50 = vmul.f32 %v3059_v47, %v1052_v48 }
 0x124   :  { %3424 = vmatpush1.bf16.msra.mxu1 %v3423_v19 }
 0x125   :  { %3434 = vmatprep.subr.bf16.mxu1 %v3433_v27 }
 0x126   :  { %3413 = vmatpush3.bf16.msra.mxu0 %v3403_v26  ;;  %v4008_v51 = vpop.f32.mrb[14].mxu1  ;;  %v1756_v26 = vld [vmem:[#allocation4 + $0x78] sm:$0xff] }
 0x127   :  { %v3358_v52 = vpop.f32.mrb[15].mxu1  ;;  %3380 = vmatprep.subr.mxu0 %v3694_v0  ;;  %v3441_v29 = vpack.c.bf16 %v1756_v26, %v1748_v25 }
 0x129   :  { %3368 = vmatmul.mubr.msk.f32.vlgmr.msra.gmra.mrb[12].mxu0 %vm411_vm6, %v1210_v50 }
 0x12a   :  { %3381 = vmatpush3.msk.msra.mxu0 %vm659_vm4, %v1458_v53  ;;  %v1382_v54 = vpop.f32.mrb[16].mxu1  ;;  %3382 = vmatprep.mubr.msk.f32.mxu0 %vm3695_vm0, %v3694_v0 }
 0x12b   :  { %v3374_v55 = vpop.f32.mrb[17].mxu1  ;;  %3414 = vmatprep.subr.bf16.mxu0 %v3696_v15  ;;  %v1768_v15 = vld [vmem:[#allocation4 + $0xd8] sm:$0xff] }
 0x12c   :  { %v3429_v18 = vpack.c.bf16 %v1768_v15, %v1760_v13 }
 0x12d   :  { %3383 = vmatmul.mubr.msk.f32.vlgmr.msra.gmra.mrb[14].mxu0 %vm655_vm5, %v1382_v54 }
 0x12e   :  { %3416 = vmatpush3.bf16.msra.mxu0 %v3406_v36  ;;  %v1453_v57 = vpop.f32.mrb[18].mxu1  ;;  %3396 = vmatprep.mubr.msk.f32.mxu0 %vm3695_vm0, %v3694_v0 }
 0x12f   :  { %v1611_v58 = vmul.f32 %v3070_v56, %v1453_v57  ;;  %v3379_v59 = vpop.f32.mrb[19].mxu1  ;;  %3394 = vmatprep.subr.mxu0 %v3694_v0 }
 0x132   :  { %3395 = vmatpush3.msra.mxu0 %v812_v40  ;;  %v4028_v60 = vpop.f32.mrb[20].mxu1 }
 0x133   :  { %3397 = vmatmul.mubr.msk.f32.vlgmr.msra.gmra.mrb[16].mxu0 %vm813_vm7, %v1611_v58  ;;  %v3389_v61 = vpop.f32.mrb[21].mxu1  ;;  %3426 = vmatprep.subr.bf16.mxu0 %v3425_v6 }
 0x134   :  { %1911 = vmatprep.mubr.f32.mxu0 %v3694_v0  ;;  %3428 = vmatpush1.bf16.msra.mxu0 %v3427_v10 }
 0x135   :  { %3430 = vmatprep.subr.bf16.mxu0 %v3429_v18 }
 0x138   :  { %3432 = vmatpush1.bf16.msra.mxu0 %v3431_v23 }
 0x139   :  { %3442 = vmatprep.subr.bf16.mxu0 %v3441_v29 }
 0x1de   :  { %v326_v30 = vpop.f32.mrb[2].mxu0 }
 0x1df   :  { %v403_v31 = vadd.f32 %v3963_v28, %v326_v30  ;;  %v3293_v32 = vpop.f32.mrb[3].mxu0  ;;  %v3056_v28 = vld [vmem:[%s4366_s15] ss:$0 sm:$0xff] }
 0x1e6   :  { %v481_v33 = vpop.f32.mrb[4].mxu0 }
 0x1e7   :  { %v485_v35 = vadd.f32 %v481_v33, %v403_v31  ;;  %v3309_v36 = vpop.f32.mrb[5].mxu0  ;;  %v1745_v33 = vld [vmem:[#allocation4 + $0x20] sm:$0xff] }
 0x1e8   :  { %v1755_v36 = vld [vmem:[#allocation4 + $0x70] sm:$0xff] }
 0x1e9   :  { %v493_v37 = vadd.f32 %v3048_v34, %v485_v35  ;;  %v1747_v35 = vld [vmem:[#allocation4 + $0x30] sm:$0xff] }
 0x1ea   :  { %v729_v38 = vpop.f32.mrb[6].mxu0 }
 0x1eb   :  { %v494_v39 = vmax.f32 %v493_v37, 0.0  ;;  %v806_v40 = vadd.f32 %v3990_v41, %v729_v38  ;;  %v3324_v42 = vpop.f32.mrb[7].mxu0  ;;  %v1762_v37 = vld [vmem:[#allocation4 + $0xa8] sm:$0xff] }
 0x1ec   :  { %v1770_v38 = vld [vmem:[#allocation4 + $0xe8] sm:$0xff] }
 0x1ed   :  { %v495_v43 = vsel %vm411_vm6, %v494_v39, 0.0  ;;  %v1764_v39 = vld [vmem:[#allocation4 + $0xb8] sm:$0xff] }
 0x1ee   :  { %v496_v44 = vrot.slane %v495_v43, 4 }
 0x1f0   :  { %v497_v45 = vadd.f32 %v496_v44, %v495_v43  ;;  %v883_v46 = vpop.f32.mrb[8].mxu0  ;;  %v3443_v43 = vpack.c.bf16 %v1755_v36, %v1747_v35  ;;  %v1761_v44 = vld [vmem:[#allocation4 + $0xa0] sm:$0xff] }
 0x1f1   :  { %v887_v47 = vadd.f32 %v883_v46, %v806_v40  ;;  %v3338_v48 = vpop.f32.mrb[9].mxu0  ;;  %v1772_v40 = vld [vmem:[#allocation4 + $0xf8] sm:$0xff]  ;;  %v1763_v46 = vld [vmem:[#allocation4 + $0xb0] sm:$0xff] }
 0x1f2   :  { %v498_v49 = vrot.slane %v497_v45, 2  ;;  %v1771_v48 = vld [vmem:[#allocation4 + $0xf0] sm:$0xff] }
 0x1f3   :  { %v895_v50 = vadd.f32 %v3056_v28, %v887_v47  ;;  %v3445_v47 = vpack.c.bf16 %v1772_v40, %v1764_v39 }
 0x1f4   :  { %v499_v52 = vadd.f32 %v498_v49, %v497_v45  ;;  %v1130_v53 = vpop.f32.mrb[10].mxu0  ;;  %v1769_v45 = vld [vmem:[#allocation4 + $0xe0] sm:$0xff] }
 0x1f5   :  { %v896_v54 = vmax.f32 %v895_v50, 0.0  ;;  %v1207_v55 = vadd.f32 %v4008_v51, %v1130_v53  ;;  %v3353_v41 = vpop.f32.mrb[11].mxu0  ;;  %v1709_v49 = vld [vmem:[%s4367_s16 + $0x8] sm:$0xff]  ;;  %v1711_v53 = vld [vmem:[%s4367_s16 + $0x18] sm:$0xff] }
 0x1f6   :  { %v500_v56 = vrot.slane %v499_v52, 1  ;;  %v1717_v50 = vld [vmem:[%s4367_s16 + $0x48] sm:$0xff]  ;;  %v3447_v41 = vpack.c.bf16 %v1771_v48, %v1763_v46 }
 0x1f7   :  { %v897_v57 = vsel %vm411_vm6, %v896_v54, 0.0  ;;  %v1719_v54 = vld [vmem:[%s4367_s16 + $0x58] sm:$0xff] }
 0x1f8   :  { %v501_v58 = vadd.f32 %v500_v56, %v499_v52  ;;  %v898_v59 = vrot.slane %v897_v57, 4  ;;  %v1708_v56 = vld [vmem:[%s4367_s16] sm:$0xff] }
 0x1fa   :  { %v503_v61 = vmul.f32 0.125, %v501_v58  ;;  %v899_v62 = vadd.f32 %v898_v59, %v897_v57  ;;  %v1716_v57 = vld [vmem:[%s4367_s16 + $0x40] sm:$0xff]  ;;  %v3449_v58 = vpack.c.bf16 %v1717_v50, %v1709_v49  ;;  %v3457_v59 = vpack.c.bf16 %v1719_v54, %v1711_v53 }
 0x1fc   :  { %505 = vst.msk [vmem:[#allocation2] sm:$0x1] %vm504_vm8, %v503_v61  ;;  %v900_v63 = vrot.slane %v899_v62, 2  ;;  %v1284_v1 = vpop.f32.mrb[12].mxu0  ;;  %v1710_v61 = vld [vmem:[%s4367_s16 + $0x10] sm:$0xff] }
 0x1fd   :  { %v1288_v2 = vadd.f32 %v1284_v1, %v1207_v55  ;;  %v3369_v3 = vpop.f32.mrb[13].mxu0  ;;  %v3439_v55 = vpack.c.bf16 %v1769_v45, %v1761_v44  ;;  %v1733_v1 = vld [vmem:[%s4367_s16 + $0xc8] sm:$0xff] }
 0x1fe   :  { %v901_v4 = vadd.f32 %v900_v63, %v899_v62  ;;  %v1718_v62 = vld [vmem:[%s4367_s16 + $0x50] sm:$0xff]  ;;  %v1725_v63 = vld [vmem:[%s4367_s16 + $0x88] sm:$0xff]  ;;  %v1735_v3 = vld [vmem:[%s4367_s16 + $0xd8] sm:$0xff] }
 0x1ff   :  { %v1296_v5 = vadd.f32 %v3048_v34, %v1288_v2  ;;  %v1753_v34 = vld [vmem:[#allocation4 + $0x60] sm:$0xff]  ;;  %v1727_v2 = vld [vmem:[%s4367_s16 + $0x98] sm:$0xff] }
 0x200   :  { %v902_v6 = vrot.slane %v901_v4, 1  ;;  %v1531_v7 = vpop.f32.mrb[14].mxu0  ;;  %v3435_v42 = vpack.c.bf16 %v1753_v34, %v1745_v33  ;;  %v1730_v33 = vld [vmem:[%s4367_s16 + $0xb0] sm:$0xff] }
 0x201   :  { %v1297_v51 = vmax.f32 %v1296_v5, 0.0  ;;  %v3384_v8 = vpop.f32.mrb[15].mxu0  ;;  %v1608_v9 = vadd.f32 %v4028_v60, %v1531_v7  ;;  %v3459_v5 = vpack.c.bf16 %v1718_v62, %v1710_v61  ;;  %v1732_v7 = vld [vmem:[%s4367_s16 + $0xc0] sm:$0xff]  ;;  %v1738_v34 = vld [vmem:[%s4367_s16 + $0xf0] sm:$0xff] }
 0x202   :  { %v903_v10 = vadd.f32 %v902_v6, %v901_v4  ;;  %v3451_v4 = vpack.c.bf16 %v1716_v57, %v1708_v56  ;;  %v1724_v6 = vld [vmem:[%s4367_s16 + $0x80] sm:$0xff]  ;;  %v3461_v8 = vpack.c.bf16 %v1735_v3, %v1727_v2 }
 0x203   :  { %v1298_v11 = vsel %vm411_vm6, %v1297_v51, 0.0  ;;  %v3453_v51 = vpack.c.bf16 %v1733_v1, %v1725_v63 }
 0x204   :  { %v904_v12 = vmul.f32 0.125, %v903_v10  ;;  %v1299_v13 = vrot.slane %v1298_v11, 4  ;;  %v1734_v10 = vld [vmem:[%s4367_s16 + $0xd0] sm:$0xff] }
 0x206   :  { %905 = vst.msk [vmem:[#allocation3] sm:$0x1] %vm504_vm8, %v904_v12  ;;  %v1300_v14 = vadd.f32 %v1299_v13, %v1298_v11  ;;  %v1684_v15 = vpop.f32.mrb[16].mxu0  ;;  %v1713_v11 = vld [vmem:[%s4367_s16 + $0x28] sm:$0xff]  ;;  %v1715_v13 = vld [vmem:[%s4367_s16 + $0x38] sm:$0xff] }
 0x207   :  { %v1688_v16 = vadd.f32 %v1684_v15, %v1608_v9  ;;  %v3398_v17 = vpop.f32.mrb[17].mxu0  ;;  %v1726_v9 = vld [vmem:[%s4367_s16 + $0x90] sm:$0xff]  ;;  %v1721_v12 = vld [vmem:[%s4367_s16 + $0x68] sm:$0xff]  ;;  %v3455_v15 = vpack.c.bf16 %v1732_v7, %v1724_v6 }
 0x208   :  { %v1301_v18 = vrot.slane %v1300_v14, 2  ;;  %v1712_v17 = vld [vmem:[%s4367_s16 + $0x20] sm:$0xff] }
 0x209   :  { %v1696_v19 = vadd.f32 %v3056_v28, %v1688_v16  ;;  %v3437_v28 = vpack.c.bf16 %v1770_v38, %v1762_v37  ;;  %v3463_v16 = vpack.c.bf16 %v1734_v10, %v1726_v9  ;;  %v3479_v37 = vpack.c.bf16 %v1738_v34, %v1730_v33  ;;  %v2464_v33 = vld [vmem:[#allocation6 + $0x8] sm:$0xff]  ;;  %v2481_v34 = vld [vmem:[#allocation6 + $0x90] sm:$0xff] }
 0x20a   :  { %v1302_v20 = vadd.f32 %v1301_v18, %v1300_v14  ;;  %v1723_v14 = vld [vmem:[%s4367_s16 + $0x78] sm:$0xff]  ;;  %v1720_v18 = vld [vmem:[%s4367_s16 + $0x60] sm:$0xff]  ;;  %v2349_v38 = vlaneseq }
 0x20b   :  { %v1697_v21 = vmax.f32 %v1696_v19, 0.0  ;;  %v3465_v19 = vpack.c.bf16 %v1721_v12, %v1713_v11 }
 0x20c   :  { %v1303_v22 = vrot.slane %v1302_v20, 1  ;;  %v2350_v39 = vshrl.u32 %v2349_v38, 7 }
 0x20d   :  { %v1698_v23 = vsel %vm411_vm6, %v1697_v21, 0.0  ;;  %v1714_v21 = vld [vmem:[%s4367_s16 + $0x30] sm:$0xff] }
 0x20e   :  { %v1304_v24 = vadd.f32 %v1303_v22, %v1302_v20  ;;  %v1699_v60 = vrot.slane %v1698_v23, 4  ;;  %v3473_v20 = vpack.c.bf16 %v1723_v14, %v1715_v13  ;;  %v1722_v22 = vld [vmem:[%s4367_s16 + $0x70] sm:$0xff]  ;;  %v4159_v40 = vsub.s32 0, %v2350_v39 }
 0x20f   :  { %v4164_v44 = vsub.s32 1, %v2350_v39  ;;  %v2363_v45 = vsub.s32 3, %v2350_v39 }
 0x210   :  { %v1305_v25 = vmul.f32 0.125, %v1304_v24  ;;  %v1700_v26 = vadd.f32 %v1699_v60, %v1698_v23  ;;  %v1729_v23 = vld [vmem:[%s4367_s16 + $0xa8] sm:$0xff]  ;;  %v1731_v60 = vld [vmem:[%s4367_s16 + $0xb8] sm:$0xff] }
 0x211   :  { %v1737_v24 = vld [vmem:[%s4367_s16 + $0xe8] sm:$0xff] }
 0x212   :  { %1306 = vst.msk [vmem:[#allocation2 + $0x1] sm:$0x1] %vm504_vm8, %v1305_v25  ;;  %v1701_v27 = vrot.slane %v1700_v26, 2  ;;  %v1739_v25 = vld [vmem:[%s4367_s16 + $0xf8] sm:$0xff] }
 0x214   :  { %v1702_v29 = vadd.f32 %v1701_v27, %v1700_v26  ;;  %v3467_v26 = vpack.c.bf16 %v1720_v18, %v1712_v17  ;;  %v3475_v27 = vpack.c.bf16 %v1722_v22, %v1714_v21 }
 0x216   :  { %v1703_v30 = vrot.slane %v1702_v29, 1 }
 0x218   :  { %v1704_v31 = vadd.f32 %v1703_v30, %v1702_v29  ;;  %v1728_v29 = vld [vmem:[%s4367_s16 + $0xa0] sm:$0xff]  ;;  %v3469_v30 = vpack.c.bf16 %v1737_v24, %v1729_v23 }
 0x219   :  { %v1707_v35 = vld [vmem:[#allocation2] sm:$0x3] }
 0x21a   :  { %v1705_v32 = vmul.f32 0.125, %v1704_v31  ;;  %v3477_v31 = vpack.c.bf16 %v1739_v25, %v1731_v60 }
 0x21c   :  { %1706 = vst.msk [vmem:[#allocation3 + $0x1] sm:$0x1] %vm504_vm8, %v1705_v32  ;;  %v1736_v32 = vld [vmem:[%s4367_s16 + $0xe0] sm:$0xff] }
 0x21d   :  { %v3471_v36 = vpack.c.bf16 %v1736_v32, %v1728_v29  ;;  %v2479_v29 = vld [vmem:[#allocation6 + $0x80] sm:$0xff] }
 0x223   :  { %v1740_v52 = vld [vmem:[#allocation3] sm:$0x3] }
 0x224   :  { %3079 = vmatmul.mubr.msk.f32.vlgmr.msra.gmra.mrb[22].mxu1 %vm411_vm6, %v1740_v52  ;;  %3080 = vmatmul.mubr.msk.f32.vlgmr.msra.gmra.mrb[18].mxu0 %vm411_vm6, %v1740_v52 }
 0x225   :  { %3436 = vmatpush1.bf16.msra.mxu1 %v3435_v42  ;;  %3444 = vmatpush1.bf16.msra.mxu0 %v3443_v43  ;;  %v2359_v42 = vsub.s32 2, %v2350_v39  ;;  %v2347_v43 = vld [vmem:[%s4369_s18] sm:$0xff] }
 0x226   :  { %3438 = vmatprep.subr.bf16.mxu1 %v3437_v28  ;;  %3446 = vmatprep.subr.bf16.mxu0 %v3445_v47  ;;  %v2356_v28 = vrot.slane %v2347_v43, %v4164_v44  ;;  %v2364_v47 = vrot.slane %v2347_v43, %v2363_v45 }
 0x227   :  { %1982 = vmatprep.mubr.f32.mxu1 %v3694_v0  ;;  %2053 = vmatprep.mubr.f32.mxu0 %v3694_v0  ;;  %v2360_v46 = vrot.slane %v2347_v43, %v2359_v42  ;;  %v2631_v42 = vld [vmem:[#allocation6 + $0x188] sm:$0xff] }
 0x229   :  { %3440 = vmatpush1.bf16.msra.mxu1 %v3439_v55  ;;  %3448 = vmatpush1.bf16.msra.mxu0 %v3447_v41  ;;  %v2367_v55 = vsub.s32 4, %v2350_v39  ;;  %v2375_v41 = vsub.s32 6, %v2350_v39 }
 0x22a   :  { %3450 = vmatprep.subr.bf16.mxu1 %v3449_v58  ;;  %3458 = vmatprep.subr.bf16.mxu0 %v3457_v59  ;;  %v2371_v58 = vsub.s32 5, %v2350_v39  ;;  %v2379_v59 = vsub.s32 7, %v2350_v39  ;;  %v2630_v39 = vld [vmem:[#allocation6 + $0x180] sm:$0xff] }
 0x22b   :  { %v2368_v2 = vrot.slane %v2347_v43, %v2367_v55  ;;  %v2376_v3 = vrot.slane %v2347_v43, %v2375_v41  ;;  %v3513_v45 = vpack.c.bf16 %v2631_v42, %v2630_v39  ;;  %v2633_v41 = vld [vmem:[#allocation6 + $0x198] sm:$0xff]  ;;  %v2635_v39 = vld [vmem:[#allocation6 + $0x1a8] sm:$0xff]  ;;  %v2469_v42 = vld [vmem:[#allocation6 + $0x30] sm:$0xff] }
 0x22c   :  { %3081 = vmatmul.mubr.msk.f32.vlgmr.msra.gmra.mrb[24].mxu1 %vm411_vm6, %v1740_v52  ;;  %3082 = vmatmul.mubr.msk.f32.vlgmr.msra.gmra.mrb[20].mxu0 %vm411_vm6, %v1740_v52  ;;  %v2372_v6 = vrot.slane %v2347_v43, %v2371_v58  ;;  %v2380_v7 = vrot.slane %v2347_v43, %v2379_v59  ;;  %v2467_v58 = vld [vmem:[#allocation6 + $0x20] sm:$0xff]  ;;  %v2468_v59 = vld [vmem:[#allocation6 + $0x28] sm:$0xff] }
 0x22d   :  { %3452 = vmatpush1.bf16.msra.mxu1 %v3451_v4  ;;  %3460 = vmatpush1.bf16.msra.mxu0 %v3459_v5 }
 0x22e   :  { %3454 = vmatprep.subr.bf16.mxu1 %v3453_v51  ;;  %3462 = vmatprep.subr.bf16.mxu0 %v3461_v8 }
 0x22f   :  { %2127 = vmatprep.mubr.f32.mxu1 %v3694_v0  ;;  %2198 = vmatprep.mubr.f32.mxu0 %v3694_v0 }
 0x231   :  { %3456 = vmatpush1.bf16.msra.mxu1 %v3455_v15  ;;  %3464 = vmatpush1.bf16.msra.mxu0 %v3463_v16 }
 0x232   :  { %3466 = vmatprep.subr.bf16.mxu1 %v3465_v19  ;;  %3474 = vmatprep.subr.bf16.mxu0 %v3473_v20 }
 0x234   :  { %3083 = vmatmul.mubr.msk.f32.vlgmr.msra.gmra.mrb[22].mxu1 %vm411_vm6, %v1707_v35  ;;  %3084 = vmatmul.mubr.msk.f32.vlgmr.msra.gmra.mrb[18].mxu0 %vm411_vm6, %v1707_v35 }
 0x235   :  { %3468 = vmatpush1.bf16.msra.mxu1 %v3467_v26  ;;  %3476 = vmatpush1.bf16.msra.mxu0 %v3475_v27 }
 0x236   :  { %3470 = vmatprep.subr.bf16.mxu1 %v3469_v30  ;;  %3478 = vmatprep.subr.bf16.mxu0 %v3477_v31  ;;  %v2480_v30 = vld [vmem:[#allocation6 + $0x88] sm:$0xff]  ;;  %v2463_v31 = vld [vmem:[#allocation6] sm:$0xff] }
 0x237   :  { %2269 = vmatprep.mubr.f32.mxu1 %v3694_v0  ;;  %2340 = vmatprep.mubr.f32.mxu0 %v3694_v0  ;;  %v2352_v0 = vrot.slane %v2347_v43, %v4159_v40  ;;  %v3481_v32 = vpack.c.bf16 %v2480_v30, %v2479_v29  ;;  %v2465_v43 = vld [vmem:[#allocation6 + $0x10] sm:$0xff] }
 0x239   :  { %3472 = vmatpush1.bf16.msra.mxu1 %v3471_v36  ;;  %3480 = vmatpush1.bf16.msra.mxu0 %v3479_v37  ;;  %v3483_v36 = vpack.c.bf16 %v2464_v33, %v2463_v31 }
 0x23a   :  { %3482 = vmatprep.subr.bf16.mxu1 %v3481_v32  ;;  %3514 = vmatprep.subr.bf16.mxu0 %v3513_v45 }
 0x23c   :  { %3085 = vmatmul.mubr.msk.f32.vlgmr.msra.gmra.mrb[24].mxu1 %vm411_vm6, %v1707_v35  ;;  %3086 = vmatmul.mubr.msk.f32.vlgmr.msra.gmra.mrb[20].mxu0 %vm411_vm6, %v1707_v35  ;;  %v2482_v35 = vld [vmem:[#allocation6 + $0x98] sm:$0xff] }
 0x23d   :  { %v3485_v37 = vpack.c.bf16 %v2482_v35, %v2481_v34  ;;  %3484 = vmatpush3.bf16.msra.mxu1 %v3483_v36  ;;  %v2634_v36 = vld [vmem:[#allocation6 + $0x1a0] sm:$0xff] }
 0x23e   :  { %v3521_v45 = vpack.c.bf16 %v2635_v39, %v2634_v36  ;;  %v2626_v39 = vld [vmem:[#allocation6 + $0x160] sm:$0xff] }
 0x23f   :  { %3486 = vmatprep.subr.bf16.mxu1 %v3485_v37 }
 0x307   :  { %v2129_v48 = vpop.f32.mrb[22].mxu1  ;;  %v2200_v49 = vpop.f32.mrb[18].mxu0 }
 0x308   :  { %v4168_v50 = vadd.f32 %v2352_v0, %v2129_v48  ;;  %v4170_v52 = vadd.f32 %v2360_v46, %v2200_v49  ;;  %v2131_v53 = vpop.f32.mrb[23].mxu1  ;;  %v2202_v54 = vpop.f32.mrb[19].mxu0  ;;  %v2466_v0 = vld [vmem:[#allocation6 + $0x18] sm:$0xff]  ;;  %v2614_v46 = vld [vmem:[#allocation6 + $0x100] sm:$0xff] }
 0x309   :  { %v4172_v56 = vadd.f32 %v2356_v28, %v2131_v53  ;;  %v4174_v57 = vadd.f32 %v2364_v47, %v2202_v54  ;;  %v2615_v28 = vld [vmem:[#allocation6 + $0x108] sm:$0xff]  ;;  %v3487_v47 = vpack.c.bf16 %v2466_v0, %v2465_v43  ;;  %v2483_v49 = vld [vmem:[#allocation6 + $0xa0] sm:$0xff]  ;;  %v2632_v54 = vld [vmem:[#allocation6 + $0x190] sm:$0xff] }
 0x30a   :  { %v2397_v61 = vmax.f32 %v4168_v50, 0.0  ;;  %v2399_v62 = vmax.f32 %v4170_v52, 0.0  ;;  %v3515_v48 = vpack.c.bf16 %v2615_v28, %v2614_v46  ;;  %v2484_v53 = vld [vmem:[#allocation6 + $0xa8] sm:$0xff]  ;;  %v2470_v43 = vld [vmem:[#allocation6 + $0x38] sm:$0xff]  ;;  %v2618_v46 = vld [vmem:[#allocation6 + $0x120] sm:$0xff] }
 0x30b   :  { %v2398_v63 = vmax.f32 %v4172_v56, 0.0  ;;  %v2400_v1 = vmax.f32 %v4174_v57, 0.0  ;;  %v3489_v55 = vpack.c.bf16 %v2484_v53, %v2483_v49  ;;  %3488 = vmatpush3.bf16.msra.mxu1 %v3487_v47  ;;  %v3495_v0 = vpack.c.bf16 %v2470_v43, %v2469_v42  ;;  %v2619_v28 = vld [vmem:[#allocation6 + $0x128] sm:$0xff]  ;;  %v2636_v53 = vld [vmem:[#allocation6 + $0x1b0] sm:$0xff] }
 0x30c   :  { %v2414_v4 = vsel %vm2413_vm9, %v2397_v61, 0.0  ;;  %v2566_v10 = vsel %vm2413_vm9, %v2399_v62, 0.0  ;;  %3516 = vmatpush3.bf16.msra.mxu0 %v3515_v48  ;;  %v3523_v47 = vpack.c.bf16 %v2619_v28, %v2618_v46  ;;  %v2487_v48 = vld [vmem:[#allocation6 + $0xc0] sm:$0xff]  ;;  %v2488_v49 = vld [vmem:[#allocation6 + $0xc8] sm:$0xff] }
 0x30d   :  { %v2415_v5 = vsel %vm2413_vm9, %v2398_v63, 0.0  ;;  %v2567_v11 = vsel %vm2413_vm9, %v2400_v1, 0.0  ;;  %3490 = vmatprep.subr.bf16.mxu1 %v3489_v55  ;;  %v2637_v55 = vld [vmem:[#allocation6 + $0x1b8] sm:$0xff]  ;;  %v2627_v42 = vld [vmem:[#allocation6 + $0x168] sm:$0xff]  ;;  %v2781_v46 = vld [vmem:[#allocation6 + $0x280] sm:$0xff] }
 0x30e   :  { %v2416_v51 = vadd.f32 %v2415_v5, %v2414_v4  ;;  %v2568_v19 = vadd.f32 %v2567_v11, %v2566_v10  ;;  %v2617_v4 = vld [vmem:[#allocation6 + $0x118] sm:$0xff]  ;;  %v3539_v43 = vpack.c.bf16 %v2627_v42, %v2626_v39 }
 0x30f   :  { %v2271_v8 = vpop.f32.mrb[24].mxu1  ;;  %v2342_v9 = vpop.f32.mrb[20].mxu0  ;;  %v2768_v42 = vld [vmem:[#allocation6 + $0x218] sm:$0xff] }
 0x310   :  { %v4192_v12 = vadd.f32 %v2368_v2, %v2271_v8  ;;  %v4194_v13 = vadd.f32 %v2376_v3, %v2342_v9  ;;  %2417 = vadd.xlane.f32.xlu0 %v2416_v51  ;;  %v2273_v14 = vpop.f32.mrb[25].mxu1  ;;  %v2344_v15 = vpop.f32.mrb[21].mxu0  ;;  %v3517_v2 = vpack.c.bf16 %v2633_v41, %v2632_v54  ;;  %v2616_v3 = vld [vmem:[#allocation6 + $0x110] sm:$0xff]  ;;  %v3497_v54 = vpack.c.bf16 %v2488_v49, %v2487_v48  ;;  %v2471_v41 = vld [vmem:[#allocation6 + $0x40] sm:$0xff]  ;;  %v2629_v49 = vld [vmem:[#allocation6 + $0x178] sm:$0xff] }
 0x311   :  { %v4196_v16 = vadd.f32 %v2372_v6, %v2273_v14  ;;  %v4198_v17 = vadd.f32 %v2380_v7, %v2344_v15  ;;  %v3519_v5 = vpack.c.bf16 %v2617_v4, %v2616_v3  ;;  %v3491_v6 = vpack.c.bf16 %v2468_v59, %v2467_v58  ;;  %v2472_v58 = vld [vmem:[#allocation6 + $0x48] sm:$0xff]  ;;  %v2620_v3 = vld [vmem:[#allocation6 + $0x130] sm:$0xff]  ;;  %v2621_v4 = vld [vmem:[#allocation6 + $0x138] sm:$0xff] }
 0x312   :  { %v2401_v18 = vmax.f32 %v4192_v12, 0.0  ;;  %v2403_v20 = vmax.f32 %v4194_v13, 0.0  ;;  %3518 = vmatprep.subr.bf16.mxu0 %v3517_v2  ;;  %v3525_v59 = vpack.c.bf16 %v2637_v55, %v2636_v53  ;;  %v3499_v2 = vpack.c.bf16 %v2472_v58, %v2471_v41  ;;  %v2628_v48 = vld [vmem:[#allocation6 + $0x170] sm:$0xff]  ;;  %v2932_v55 = vld [vmem:[#allocation6 + $0x380] sm:$0xff]  ;;  %v2933_v41 = vld [vmem:[#allocation6 + $0x388] sm:$0xff] }
 0x313   :  { %v2402_v21 = vmax.f32 %v4196_v16, 0.0  ;;  %v2404_v22 = vmax.f32 %v4198_v17, 0.0  ;;  %3520 = vmatpush3.bf16.msra.mxu0 %v3519_v5  ;;  %3492 = vmatpush3.bf16.msra.mxu1 %v3491_v6  ;;  %v2485_v17 = vld [vmem:[#allocation6 + $0xb0] sm:$0xff]  ;;  %v3527_v5 = vpack.c.bf16 %v2621_v4, %v2620_v3  ;;  %v3577_v58 = vpack.c.bf16 %v2933_v41, %v2932_v55 }
 0x314   :  { %2569 = vadd.xlane.f32.xlu0 %v2568_v19  ;;  %v2717_v23 = vsel %vm2413_vm9, %v2401_v18, 0.0  ;;  %v2868_v25 = vsel %vm2413_vm9, %v2403_v20, 0.0  ;;  %3522 = vmatprep.subr.bf16.mxu0 %v3521_v45  ;;  %v2489_v6 = vld [vmem:[#allocation6 + $0xd0] sm:$0xff] }
 0x315   :  { %v2718_v24 = vsel %vm2413_vm9, %v2402_v21, 0.0  ;;  %v2869_v26 = vsel %vm2413_vm9, %v2404_v22, 0.0  ;;  %v2644_v45 = vld [vmem:[#allocation6 + $0x1f0] sm:$0xff] }
 0x316   :  { %v2719_v60 = vadd.f32 %v2718_v24, %v2717_v23  ;;  %v2870_v27 = vadd.f32 %v2869_v26, %v2868_v25 }
 0x317   :  { %3524 = vmatpush3.bf16.msra.mxu0 %v3523_v47  ;;  %v2782_v47 = vld [vmem:[#allocation6 + $0x288] sm:$0xff] }
 0x318   :  { %2720 = vadd.xlane.f32.xlu1 %v2719_v60  ;;  %3526 = vmatprep.subr.bf16.mxu0 %v3525_v59  ;;  %v3545_v53 = vpack.c.bf16 %v2782_v47, %v2781_v46  ;;  %v2785_v46 = vld [vmem:[#allocation6 + $0x2a0] sm:$0xff] }
 0x31b   :  { %3528 = vmatpush3.bf16.msra.mxu0 %v3527_v5 }
 0x31c   :  { %2871 = vadd.xlane.f32.xlu1 %v2870_v27 }
 0x39d   :  { %v2418_v7 = vpop.xlane.xlu0 %2417 }
 0x39e   :  { %v2420_v51 = vmul.f32 0.00390625, %v2418_v7  ;;  %v2490_v7 = vld [vmem:[#allocation6 + $0xd8] sm:$0xff] }
 0x3a0   :  { %v4218_v8 = vsub.f32 %v2397_v61, %v2420_v51  ;;  %v4222_v9 = vsub.f32 %v2398_v63, %v2420_v51  ;;  %v2638_v51 = vld [vmem:[#allocation6 + $0x1c0] sm:$0xff] }
 0x3a1   :  { %v2570_v10 = vpop.xlane.xlu0 %2569 }
 0x3a2   :  { %v2571_v11 = vmul.f32 0.00390625, %v2570_v10  ;;  %v2423_v14 = vmul.f32 %v4218_v8, %v4218_v8  ;;  %v2424_v15 = vmul.f32 %v4222_v9, %v4222_v9  ;;  %v3501_v10 = vpack.c.bf16 %v2490_v7, %v2489_v6 }
 0x3a4   :  { %v4230_v19 = vsub.f32 %v2399_v62, %v2571_v11  ;;  %v4234_v50 = vsub.f32 %v2400_v1, %v2571_v11  ;;  %v2425_v56 = vsel %vm2413_vm9, %v2423_v14, 0.0  ;;  %v2426_v61 = vsel %vm2413_vm9, %v2424_v15, 0.0  ;;  %v2639_v11 = vld [vmem:[#allocation6 + $0x1c8] sm:$0xff]  ;;  %v2473_v14 = vld [vmem:[#allocation6 + $0x50] sm:$0xff]  ;;  %v2474_v15 = vld [vmem:[#allocation6 + $0x58] sm:$0xff] }
 0x3a5   :  { %v2721_v63 = vpop.xlane.xlu1 %2720  ;;  %v2427_v23 = vadd.f32 %v2426_v61, %v2425_v56  ;;  %v3529_v56 = vpack.c.bf16 %v2639_v11, %v2638_v51  ;;  %v3503_v61 = vpack.c.bf16 %v2474_v15, %v2473_v14  ;;  %v2435_v11 = vld [vmem:[%s4370_s19] sm:$0x3] }
 0x3a6   :  { %v2722_v24 = vmul.f32 0.00390625, %v2721_v63  ;;  %v2574_v60 = vmul.f32 %v4230_v19, %v4230_v19  ;;  %v2575_v25 = vmul.f32 %v4234_v50, %v4234_v50  ;;  %v2622_v63 = vld [vmem:[#allocation6 + $0x140] sm:$0xff] }
 0x3a7   :  { %2428 = vadd.xlane.f32.xlu0 %v2427_v23  ;;  %v2623_v23 = vld [vmem:[#allocation6 + $0x148] sm:$0xff]  ;;  %3530 = vmatprep.subr.bf16.mxu0 %v3529_v56  ;;  %v2449_v56 = vld [vmem:[%s4371_s20] sm:$0x3] }
 0x3a8   :  { %v4244_v52 = vsub.f32 %v2401_v18, %v2722_v24  ;;  %v4248_v57 = vsub.f32 %v2402_v21, %v2722_v24  ;;  %v2576_v62 = vsel %vm2413_vm9, %v2574_v60, 0.0  ;;  %v2577_v1 = vsel %vm2413_vm9, %v2575_v25, 0.0  ;;  %v2491_v60 = vld [vmem:[#allocation6 + $0xe0] sm:$0xff]  ;;  %v2492_v25 = vld [vmem:[#allocation6 + $0xe8] sm:$0xff] }
 0x3a9   :  { %v2872_v26 = vpop.xlane.xlu1 %2871  ;;  %v2578_v27 = vadd.f32 %v2577_v1, %v2576_v62  ;;  %v3531_v24 = vpack.c.bf16 %v2623_v23, %v2622_v63  ;;  %v2640_v62 = vld [vmem:[#allocation6 + $0x1d0] sm:$0xff]  ;;  %v3505_v1 = vpack.c.bf16 %v2492_v25, %v2491_v60  ;;  %v2444_v63 = vrot.slane %v2435_v11, %v4164_v44  ;;  %v2586_v60 = vld [vmem:[%s4370_s19 + $0x2] sm:$0x3] }
 0x3aa   :  { %v2873_v29 = vmul.f32 0.00390625, %v2872_v26  ;;  %v2725_v30 = vmul.f32 %v4244_v52, %v4244_v52  ;;  %v2726_v31 = vmul.f32 %v4248_v57, %v4248_v57  ;;  %v2641_v26 = vld [vmem:[#allocation6 + $0x1d8] sm:$0xff] }
 0x3ab   :  { %2579 = vadd.xlane.f32.xlu1 %v2578_v27  ;;  %3532 = vmatpush3.bf16.msra.mxu0 %v3531_v24  ;;  %v2475_v27 = vld [vmem:[#allocation6 + $0x60] sm:$0xff] }
 0x3ac   :  { %v4258_v12 = vsub.f32 %v2403_v20, %v2873_v29  ;;  %v4262_v16 = vsub.f32 %v2404_v22, %v2873_v29  ;;  %v2727_v18 = vsel %vm2413_vm9, %v2725_v30, 0.0  ;;  %v2728_v21 = vsel %vm2413_vm9, %v2726_v31, 0.0  ;;  %v2486_v22 = vld [vmem:[#allocation6 + $0xb8] sm:$0xff]  ;;  %v2476_v29 = vld [vmem:[#allocation6 + $0x68] sm:$0xff] }
 0x3ad   :  { %v2729_v32 = vadd.f32 %v2728_v21, %v2727_v18  ;;  %v3493_v37 = vpack.c.bf16 %v2486_v22, %v2485_v17  ;;  %v3533_v30 = vpack.c.bf16 %v2641_v26, %v2640_v62  ;;  %v3507_v31 = vpack.c.bf16 %v2476_v29, %v2475_v27  ;;  %v2624_v18 = vld [vmem:[#allocation6 + $0x150] sm:$0xff]  ;;  %v2625_v21 = vld [vmem:[#allocation6 + $0x158] sm:$0xff]  ;;  %v2765_v27 = vld [vmem:[#allocation6 + $0x200] sm:$0xff] }
 0x3ae   :  { %v2876_v33 = vmul.f32 %v4258_v12, %v4258_v12  ;;  %v2877_v34 = vmul.f32 %v4262_v16, %v4262_v16  ;;  %v2477_v17 = vld [vmem:[#allocation6 + $0x70] sm:$0xff]  ;;  %v2478_v22 = vld [vmem:[#allocation6 + $0x78] sm:$0xff]  ;;  %v2454_v62 = vrot.slane %v2449_v56, %v4159_v40  ;;  %v2766_v29 = vld [vmem:[#allocation6 + $0x208] sm:$0xff] }
 0x3af   :  { %2730 = vadd.xlane.f32.xlu0 %v2729_v32  ;;  %3494 = vmatprep.subr.bf16.mxu1 %v3493_v37  ;;  %v3535_v32 = vpack.c.bf16 %v2625_v21, %v2624_v18  ;;  %v3511_v37 = vpack.c.bf16 %v2478_v22, %v2477_v17  ;;  %v2591_v21 = vrot.slane %v2586_v60, %v4159_v40  ;;  %v4297_v17 = vld [vmem:[%s4370_s19 + $0x4] sm:$0x3] }
 0x3b0   :  { %v2878_v13 = vsel %vm2413_vm9, %v2876_v33, 0.0  ;;  %v2879_v20 = vsel %vm2413_vm9, %v2877_v34, 0.0  ;;  %3496 = vmatpush3.bf16.msra.mxu1 %v3495_v0  ;;  %3534 = vmatprep.subr.bf16.mxu0 %v3533_v30  ;;  %v2493_v33 = vld [vmem:[#allocation6 + $0xf0] sm:$0xff]  ;;  %v2494_v34 = vld [vmem:[#allocation6 + $0xf8] sm:$0xff] }
 0x3b1   :  { %v2880_v35 = vadd.f32 %v2879_v20, %v2878_v13  ;;  %3498 = vmatprep.subr.bf16.mxu1 %v3497_v54  ;;  %v2642_v13 = vld [vmem:[#allocation6 + $0x1e0] sm:$0xff]  ;;  %3536 = vmatpush3.bf16.msra.mxu0 %v3535_v32  ;;  %v3509_v20 = vpack.c.bf16 %v2494_v34, %v2493_v33  ;;  %v2645_v0 = vld [vmem:[#allocation6 + $0x1f8] sm:$0xff]  ;;  %v3543_v54 = vpack.c.bf16 %v2629_v49, %v2628_v48  ;;  %v2786_v49 = vld [vmem:[#allocation6 + $0x2a8] sm:$0xff] }
 0x3b2   :  { %v3541_v28 = vpack.c.bf16 %v2645_v0, %v2644_v45  ;;  %v2600_v30 = vld [vmem:[%s4371_s20 + $0x2] sm:$0x3]  ;;  %v2595_v32 = vrot.slane %v2586_v60, %v4164_v44  ;;  %v2917_v45 = vld [vmem:[#allocation6 + $0x308] sm:$0xff] }
 0x3b3   :  { %2881 = vadd.xlane.f32.xlu1 %v2880_v35  ;;  %v2643_v35 = vld [vmem:[#allocation6 + $0x1e8] sm:$0xff]  ;;  %v2784_v33 = vld [vmem:[#allocation6 + $0x298] sm:$0xff] }
 0x3b4   :  { %3500 = vmatpush3.bf16.msra.mxu1 %v3499_v2  ;;  %v3537_v36 = vpack.c.bf16 %v2643_v35, %v2642_v13  ;;  %v3547_v13 = vpack.c.bf16 %v2766_v29, %v2765_v27  ;;  %v2767_v35 = vld [vmem:[#allocation6 + $0x210] sm:$0xff]  ;;  %v2772_v29 = vld [vmem:[#allocation6 + $0x238] sm:$0xff] }
 0x3b5   :  { %3502 = vmatprep.subr.bf16.mxu1 %v3501_v10  ;;  %v3551_v55 = vpack.c.bf16 %v2768_v42, %v2767_v35  ;;  %v2771_v27 = vld [vmem:[#allocation6 + $0x230] sm:$0xff]  ;;  %v2774_v35 = vld [vmem:[#allocation6 + $0x248] sm:$0xff] }
 0x3b6   :  { %3538 = vmatprep.subr.bf16.mxu0 %v3537_v36  ;;  %v2791_v42 = vld [vmem:[#allocation6 + $0x2d0] sm:$0xff] }
 0x3b7   :  { %3540 = vmatpush3.bf16.msra.mxu0 %v3539_v43  ;;  %v2916_v43 = vld [vmem:[#allocation6 + $0x300] sm:$0xff] }
 0x3b8   :  { %3504 = vmatpush3.bf16.msra.mxu1 %v3503_v61  ;;  %3542 = vmatprep.subr.bf16.mxu0 %v3541_v28  ;;  %v2440_v61 = vrot.slane %v2435_v11, %v4159_v40  ;;  %v4304_v28 = vld [vmem:[%s4371_s20 + $0x4] sm:$0x3]  ;;  %v3579_v41 = vpack.c.bf16 %v2917_v45, %v2916_v43  ;;  %v2792_v43 = vld [vmem:[#allocation6 + $0x2d8] sm:$0xff] }
 0x3b9   :  { %3506 = vmatprep.subr.bf16.mxu1 %v3505_v1  ;;  %v2458_v1 = vrot.slane %v2449_v56, %v4164_v44  ;;  %v2940_v45 = vld [vmem:[#allocation6 + $0x3c0] sm:$0xff] }
 0x3bb   :  { %3544 = vmatpush3.bf16.msra.mxu0 %v3543_v54  ;;  %v2935_v54 = vld [vmem:[#allocation6 + $0x398] sm:$0xff] }
 0x3bc   :  { %3508 = vmatpush3.bf16.msra.mxu1 %v3507_v31  ;;  %3578 = vmatprep.subr.bf16.mxu0 %v3577_v58  ;;  %v2769_v58 = vld [vmem:[#allocation6 + $0x220] sm:$0xff] }
 0x3bd   :  { %3510 = vmatprep.subr.bf16.mxu1 %v3509_v20  ;;  %v2605_v20 = vrot.slane %v2600_v30, %v4159_v40 }
 0x3c0   :  { %3512 = vmatpush3.bf16.msra.mxu1 %v3511_v37 }
 0x3c1   :  { %3546 = vmatprep.subr.bf16.mxu1 %v3545_v53  ;;  %v2746_v53 = vrot.slane %v4297_v17, %v4164_v44 }
 0x434   :  { %v2429_v59 = vpop.xlane.xlu0 %2428 }
 0x435   :  { %v2430_v2 = vmul.f32 0.00390625, %v2429_v59  ;;  %v4313_v59 = vld [vmem:[%s4370_s19 + $0x6] sm:$0x3] }
 0x437   :  { %v2431_v3 = vadd.f32 1e-05, %v2430_v2 }
 0x438   :  { %v2580_v4 = vpop.xlane.xlu1 %2579 }
 0x439   :  { %3626 = vrsqrt.f32 %v2431_v3  ;;  %v2581_v5 = vmul.f32 0.00390625, %v2580_v4 }
 0x43b   :  { %v2582_v6 = vadd.f32 1e-05, %v2581_v5  ;;  %v2760_v5 = vrot.slane %v4304_v28, %v4164_v44 }
 0x43c   :  { %v2731_v7 = vpop.xlane.xlu0 %2730 }
 0x43d   :  { %3628 = vrsqrt.f32 %v2582_v6  ;;  %v2732_v51 = vmul.f32 0.00390625, %v2731_v7  ;;  %v2770_v6 = vld [vmem:[#allocation6 + $0x228] sm:$0xff]  ;;  %v2918_v7 = vld [vmem:[#allocation6 + $0x310] sm:$0xff] }
 0x43e   :  { %v3555_v60 = vpack.c.bf16 %v2770_v6, %v2769_v58  ;;  %v2794_v58 = vld [vmem:[#allocation6 + $0x2e8] sm:$0xff]  ;;  %v2777_v6 = vld [vmem:[#allocation6 + $0x260] sm:$0xff] }
 0x43f   :  { %v2733_v10 = vadd.f32 1e-05, %v2732_v51  ;;  %v2919_v51 = vld [vmem:[#allocation6 + $0x318] sm:$0xff] }
 0x440   :  { %v2882_v14 = vpop.xlane.xlu1 %2881 }
 0x441   :  { %3630 = vrsqrt.f32 %v2733_v10  ;;  %v2883_v15 = vmul.f32 0.00390625, %v2882_v14  ;;  %v3553_v10 = vpack.c.bf16 %v2786_v49, %v2785_v46  ;;  %v2787_v14 = vld [vmem:[#allocation6 + $0x2b0] sm:$0xff]  ;;  %v2776_v49 = vld [vmem:[#allocation6 + $0x258] sm:$0xff] }
 0x443   :  { %v3627_v23 = vpop.eup %3626  ;;  %v2884_v24 = vadd.f32 1e-05, %v2883_v15  ;;  %v4322_v15 = vld [vmem:[%s4371_s20 + $0x6] sm:$0x3] }
 0x444   :  { %v2434_v25 = vmul.f32 %v3627_v23, %v4222_v9  ;;  %v2433_v26 = vmul.f32 %v3627_v23, %v4218_v8  ;;  %v2783_v9 = vld [vmem:[#allocation6 + $0x290] sm:$0xff]  ;;  %v2609_v8 = vrot.slane %v2600_v30, %v4164_v44  ;;  %v2897_v23 = vrot.slane %v4313_v59, %v4164_v44 }
 0x445   :  { %3632 = vrsqrt.f32 %v2884_v24  ;;  %v3549_v0 = vpack.c.bf16 %v2784_v33, %v2783_v9  ;;  %v2790_v33 = vld [vmem:[#allocation6 + $0x2c8] sm:$0xff] }
 0x446   :  { %v2448_v31 = vmul.f32 %v2444_v63, %v2434_v25  ;;  %v2447_v18 = vmul.f32 %v2440_v61, %v2433_v26  ;;  %v2788_v61 = vld [vmem:[#allocation6 + $0x2b8] sm:$0xff]  ;;  %v2936_v63 = vld [vmem:[#allocation6 + $0x3a0] sm:$0xff]  ;;  %v3583_v25 = vpack.c.bf16 %v2919_v51, %v2918_v7  ;;  %v2911_v26 = vrot.slane %v4322_v15, %v4164_v44  ;;  %v2778_v7 = vld [vmem:[#allocation6 + $0x268] sm:$0xff] }
 0x447   :  { %v3629_v34 = vpop.eup %3628  ;;  %v3557_v30 = vpack.c.bf16 %v2788_v61, %v2787_v14  ;;  %v2773_v44 = vld [vmem:[#allocation6 + $0x240] sm:$0xff]  ;;  %v2927_v14 = vld [vmem:[#allocation6 + $0x358] sm:$0xff] }
 0x448   :  { %v2462_v22 = vadd.f32 %v2458_v1, %v2448_v31  ;;  %v2461_v36 = vadd.f32 %v2454_v62, %v2447_v18  ;;  %v2585_v37 = vmul.f32 %v3629_v34, %v4234_v50  ;;  %v2584_v39 = vmul.f32 %v3629_v34, %v4230_v19  ;;  %v2934_v50 = vld [vmem:[#allocation6 + $0x390] sm:$0xff]  ;;  %v2920_v18 = vld [vmem:[#allocation6 + $0x320] sm:$0xff]  ;;  %v2796_v61 = vld [vmem:[#allocation6 + $0x2f8] sm:$0xff] }
 0x449   :  { %v3581_v11 = vpack.c.bf16 %v2935_v54, %v2934_v50  ;;  %v2938_v34 = vld [vmem:[#allocation6 + $0x3b0] sm:$0xff]  ;;  %v3563_v46 = vpack.c.bf16 %v2774_v35, %v2773_v44  ;;  %v2924_v54 = vld [vmem:[#allocation6 + $0x340] sm:$0xff] }
 0x44a   :  { %2559 = vmatprep.mubr.f32.mxu1 %v2462_v22  ;;  %v2599_v47 = vmul.f32 %v2595_v32, %v2585_v37  ;;  %v2598_v48 = vmul.f32 %v2591_v21, %v2584_v39  ;;  %v2921_v21 = vld [vmem:[#allocation6 + $0x328] sm:$0xff]  ;;  %v2789_v32 = vld [vmem:[#allocation6 + $0x2c0] sm:$0xff]  ;;  %v2922_v37 = vld [vmem:[#allocation6 + $0x330] sm:$0xff] }
 0x44b   :  { %v4308_v19 = vpop.eup %3630  ;;  %2560 = vmatmul.mubr.f32.vlgmr.msra.gmra.mrb[26].mxu1 %v2461_v36  ;;  %v3561_v22 = vpack.c.bf16 %v2790_v33, %v2789_v32  ;;  %v2923_v39 = vld [vmem:[#allocation6 + $0x338] sm:$0xff]  ;;  %v2893_v32 = vrot.slane %v4313_v59, %v4159_v40 }
 0x44c   :  { %3548 = vmatpush3.bf16.msra.mxu1 %v3547_v13  ;;  %v2613_v2 = vadd.f32 %v2609_v8, %v2599_v47  ;;  %v2612_v3 = vadd.f32 %v2605_v20, %v2598_v48  ;;  %v2736_v4 = vmul.f32 %v4308_v19, %v4248_v57  ;;  %v2937_v57 = vld [vmem:[#allocation6 + $0x3a8] sm:$0xff]  ;;  %v2939_v13 = vld [vmem:[#allocation6 + $0x3b8] sm:$0xff]  ;;  %v3559_v20 = vpack.c.bf16 %v2772_v29, %v2771_v27  ;;  %v2775_v48 = vld [vmem:[#allocation6 + $0x250] sm:$0xff] }
 0x44d   :  { %3550 = vmatprep.subr.bf16.mxu1 %v3549_v0  ;;  %v3585_v31 = vpack.c.bf16 %v2937_v57, %v2936_v63  ;;  %v3587_v8 = vpack.c.bf16 %v2921_v21, %v2920_v18  ;;  %v3589_v36 = vpack.c.bf16 %v2939_v13, %v2938_v34  ;;  %v2941_v0 = vld [vmem:[#allocation6 + $0x3c8] sm:$0xff]  ;;  %v3591_v47 = vpack.c.bf16 %v2923_v39, %v2922_v37  ;;  %v2944_v63 = vld [vmem:[#allocation6 + $0x3e0] sm:$0xff]  ;;  %v2780_v27 = vld [vmem:[#allocation6 + $0x278] sm:$0xff] }
 0x44e   :  { %2710 = vmatprep.mubr.f32.mxu0 %v2613_v2  ;;  %v2750_v56 = vmul.f32 %v2746_v53, %v2736_v4  ;;  %v3565_v53 = vpack.c.bf16 %v2792_v43, %v2791_v42  ;;  %v3593_v50 = vpack.c.bf16 %v2941_v0, %v2940_v45  ;;  %v2942_v2 = vld [vmem:[#allocation6 + $0x3d0] sm:$0xff]  ;;  %v3567_v4 = vpack.c.bf16 %v2776_v49, %v2775_v48  ;;  %v2945_v57 = vld [vmem:[#allocation6 + $0x3e8] sm:$0xff]  ;;  %v2928_v29 = vld [vmem:[#allocation6 + $0x360] sm:$0xff] }
 0x44f   :  { %v4326_v24 = vpop.eup %3632  ;;  %2711 = vmatmul.mubr.f32.vlgmr.msra.gmra.mrb[22].mxu0 %v2612_v3  ;;  %v2943_v3 = vld [vmem:[#allocation6 + $0x3d8] sm:$0xff]  ;;  %v2946_v18 = vld [vmem:[#allocation6 + $0x3f0] sm:$0xff] }
 0x450   :  { %3552 = vmatpush3.bf16.msra.mxu1 %v3551_v55  ;;  %3580 = vmatpush3.bf16.msra.mxu0 %v3579_v41  ;;  %v2764_v62 = vadd.f32 %v2760_v5, %v2750_v56  ;;  %v2887_v1 = vmul.f32 %v4326_v24, %v4262_v16  ;;  %v2925_v55 = vld [vmem:[#allocation6 + $0x348] sm:$0xff]  ;;  %v2793_v41 = vld [vmem:[#allocation6 + $0x2e0] sm:$0xff]  ;;  %v2795_v56 = vld [vmem:[#allocation6 + $0x2f0] sm:$0xff] }
 0x451   :  { %3554 = vmatprep.subr.bf16.mxu1 %v3553_v10  ;;  %3582 = vmatprep.subr.bf16.mxu0 %v3581_v11  ;;  %v3595_v5 = vpack.c.bf16 %v2925_v55, %v2924_v54  ;;  %v3569_v51 = vpack.c.bf16 %v2794_v58, %v2793_v41  ;;  %v3597_v10 = vpack.c.bf16 %v2943_v3, %v2942_v2  ;;  %v2926_v11 = vld [vmem:[#allocation6 + $0x350] sm:$0xff]  ;;  %v2947_v21 = vld [vmem:[#allocation6 + $0x3f8] sm:$0xff]  ;;  %v3020_v58 = vand.u32 127, %v2349_v38 }
 0x452   :  { %2861 = vmatprep.mubr.f32.mxu1 %v2764_v62  ;;  %v2901_v9 = vmul.f32 %v2897_v23, %v2887_v1  ;;  %v2742_v23 = vrot.slane %v4297_v17, %v4159_v40  ;;  %v2779_v62 = vld [vmem:[#allocation6 + $0x270] sm:$0xff]  ;;  %v3573_v1 = vpack.c.bf16 %v2796_v61, %v2795_v56  ;;  %v2756_v17 = vrot.slane %v4304_v28, %v4159_v40 }
 0x453   :  { %v3605_v13 = vpack.c.bf16 %v2947_v21, %v2946_v18  ;;  %v2907_v28 = vrot.slane %v4322_v15, %v4159_v40  ;;  %vm3028_vm10 = vcmp.eq.s32.totalorder %v3020_v58, 9  ;;  %vm3021_vm11 = vcmp.eq.s32.totalorder %v3020_v58, 8 }
 0x454   :  { %3556 = vmatpush3.bf16.msra.mxu1 %v3555_v60  ;;  %3584 = vmatpush3.bf16.msra.mxu0 %v3583_v25  ;;  %v2915_v16 = vadd.f32 %v2911_v26, %v2901_v9  ;;  %v3571_v60 = vpack.c.bf16 %v2778_v7, %v2777_v6  ;;  %v3599_v25 = vpack.c.bf16 %v2927_v14, %v2926_v11 }
 0x455   :  { %3558 = vmatprep.subr.bf16.mxu1 %v3557_v30  ;;  %3586 = vmatprep.subr.bf16.mxu0 %v3585_v31  ;;  %v3601_v26 = vpack.c.bf16 %v2945_v57, %v2944_v63  ;;  %v2929_v30 = vld [vmem:[#allocation6 + $0x368] sm:$0xff]  ;;  %v2735_v31 = vmul.f32 %v4308_v19, %v4244_v52  ;;  %v3575_v9 = vpack.c.bf16 %v2780_v27, %v2779_v62 }
 0x456   :  { %3012 = vmatprep.mubr.f32.mxu0 %v2915_v16  ;;  %v3603_v33 = vpack.c.bf16 %v2929_v30, %v2928_v29  ;;  %v2930_v16 = vld [vmem:[#allocation6 + $0x370] sm:$0xff]  ;;  %v2886_v52 = vmul.f32 %v4326_v24, %v4258_v12  ;;  %v3087_v12 = vld [vmem:[%s4373_s22] ss:$0 sm:$0xff] }
 0x457   :  { %v2749_v34 = vmul.f32 %v2742_v23, %v2735_v31 }
 0x458   :  { %3560 = vmatpush3.bf16.msra.mxu1 %v3559_v20  ;;  %3588 = vmatpush3.bf16.msra.mxu0 %v3587_v8  ;;  %v2931_v20 = vld [vmem:[#allocation6 + $0x378] sm:$0xff]  ;;  %v2900_v8 = vmul.f32 %v2893_v32, %v2886_v52 }
 0x459   :  { %3562 = vmatprep.subr.bf16.mxu1 %v3561_v22  ;;  %3590 = vmatprep.subr.bf16.mxu0 %v3589_v36  ;;  %v3607_v19 = vpack.c.bf16 %v2931_v20, %v2930_v16  ;;  %v2763_v59 = vadd.f32 %v2756_v17, %v2749_v34 }
 0x45a   :  { %v2914_v44 = vadd.f32 %v2907_v28, %v2900_v8 }
 0x45c   :  { %3564 = vmatpush3.bf16.msra.mxu1 %v3563_v46  ;;  %3592 = vmatpush3.bf16.msra.mxu0 %v3591_v47 }
 0x45d   :  { %3566 = vmatprep.subr.bf16.mxu1 %v3565_v53  ;;  %3594 = vmatprep.subr.bf16.mxu0 %v3593_v50 }
 0x460   :  { %3568 = vmatpush3.bf16.msra.mxu1 %v3567_v4  ;;  %3596 = vmatpush3.bf16.msra.mxu0 %v3595_v5 }
 0x461   :  { %3570 = vmatprep.subr.bf16.mxu1 %v3569_v51  ;;  %3598 = vmatprep.subr.bf16.mxu0 %v3597_v10 }
 0x464   :  { %3572 = vmatpush3.bf16.msra.mxu1 %v3571_v60  ;;  %3600 = vmatpush3.bf16.msra.mxu0 %v3599_v25 }
 0x465   :  { %3574 = vmatprep.subr.bf16.mxu1 %v3573_v1  ;;  %3602 = vmatprep.subr.bf16.mxu0 %v3601_v26 }
 0x468   :  { %3576 = vmatpush3.bf16.msra.mxu1 %v3575_v9  ;;  %3604 = vmatpush3.bf16.msra.mxu0 %v3603_v33 }
 0x469   :  { %3606 = vmatprep.subr.bf16.mxu0 %v3605_v13 }
 0x46b   :  { %2862 = vmatmul.mubr.f32.vlgmr.msra.gmra.mrb[28].mxu1 %v2763_v59 }
 0x46c   :  { %3608 = vmatpush3.bf16.msra.mxu0 %v3607_v19 }
 0x46f   :  { %3013 = vmatmul.mubr.f32.vlgmr.msra.gmra.mrb[24].mxu0 %v2914_v44 }
 0x51e   :  { %v3171_v35 = vpop.f32.mrb[26].mxu1 }
 0x51f   :  { %v3172_v22 = vpop.f32.mrb[27].mxu1 }
 0x520   :  { %v3173_v36 = vadd.f32 %v3172_v22, %v3171_v35 }
 0x522   :  { %v3206_v24 = vpop.f32.mrb[22].mxu0  ;;  %v2565_v39 = vadd.f32 %v3173_v36, %v3087_v12 }
 0x523   :  { %v3207_v37 = vpop.f32.mrb[23].mxu0 }
 0x524   :  { %v3208_v42 = vadd.f32 %v3207_v37, %v3206_v24 }
 0x526   :  { %v2716_v43 = vadd.f32 %v3208_v42, %v2565_v39 }
 0x53e   :  { %v3241_v40 = vpop.f32.mrb[28].mxu1 }
 0x53f   :  { %v3242_v15 = vpop.f32.mrb[29].mxu1 }
 0x540   :  { %v3243_v45 = vadd.f32 %v3242_v15, %v3241_v40 }
 0x542   :  { %v2867_v0 = vadd.f32 %v3243_v45, %v2716_v43  ;;  %v3276_v46 = vpop.f32.mrb[24].mxu0 }
 0x543   :  { %v3277_v47 = vpop.f32.mrb[25].mxu0 }
 0x544   :  { %v3278_v48 = vadd.f32 %v3277_v47, %v3276_v46 }
 0x546   :  { %v3018_v49 = vadd.f32 %v3278_v48, %v2867_v0 }
 0x548   :  { %v3088_v53 = vmul.f32 -1.442695, %v3018_v49  ;;  %v3029_v50 = vmul.f32 1.442695, %v3018_v49 }
 0x54a   :  { %3634 = vpow2.f32 %v3088_v53 }
 0x54b   :  { %3636 = vpow2.f32 %v3029_v50 }
 0x554   :  { %v3635_v54 = vpop.eup %3634 }
 0x555   :  { %v3025_v55 = vadd.f32 1.0, %v3635_v54  ;;  %v3637_v41 = vpop.eup %3636 }
 0x556   :  { %v3031_v2 = vadd.f32 1e-06, %v3637_v41 }
 0x557   :  { %3638 = vrcp.f32 %v3025_v55 }
 0x558   :  { %v3032_v4 = vsel %vm3028_vm10, %v3031_v2, %v3018_v49 }
 0x561   :  { %v3639_v3 = vpop.eup %3638 }
 0x562   :  { %v3033_v5 = vsel %vm3021_vm11, %v3639_v3, %v3032_v4 }
 0x563   :  { %3034 = vst [vmem:[%s4374_s23] sm:$0x3] %v3033_v5 }
 0x564   :  { %3039 = vsyncpa [#allocation5], 1 }
 0x565   :  { %3040 = vsyncpa [#allocation7], 1 }

</bundles_post_ra>
